<compile_context>
chip_gen: v5e
topology: v5e:2x2
jax: 0.10.0
libtpu: 0.0.40
codegen_flags: <defaults>
</compile_context>

<pallas_src>
import jax
import jax.numpy as jnp
import numpy as np
from jax import lax
from jax.experimental import pallas as pl
from jax.experimental.pallas import tpu as pltpu


def _round_up(a, b):
    return -(-a // b) * b


# ----------------------------------------------------------------------------
# Pallas kernel factory: fused split-MLP -> relu -> pool(K) -> aggr-MLP
# ----------------------------------------------------------------------------
def _make_kernel(K, din, dh, dout, tr, n_sub, pool_scale, compute_dtype):
    def kernel(x_ref, w1_ref, b1_ref, w2_ref, b2_ref,
               w3_ref, b3_ref, w4_ref, b4_ref, o_ref):
        # Small resident operands (constant index_map) -- load once per step.
        w1 = w1_ref[...]
        w2 = w2_ref[...]
        w3 = w3_ref[...]
        w4 = w4_ref[...]
        b1 = b1_ref[...]
        b2 = b2_ref[...]
        b3 = b3_ref[...]
        b4 = b4_ref[...]

        def sub_tile(r, carry):
            ro = pl.multiple_of(r * tr, tr)
            acc = jnp.zeros((tr, dh), jnp.float32)
            # Split MLP per neighbour k, fused with the permutation-invariant
            # pool:  acc += relu(relu(x_k @ W1 + b1) @ W2 + b2)
            for k in range(K):                      # static, unrolled (K small)
                xk = x_ref[pl.ds(ro, tr), pl.ds(k * din, din)]
                h = jnp.dot(xk, w1, preferred_element_type=jnp.float32) + b1
                h = jnp.maximum(h, 0.0)
                h = jnp.dot(h.astype(compute_dtype), w2,
                            preferred_element_type=jnp.float32) + b2
                acc = acc + jnp.maximum(h, 0.0)
            pooled = acc * pool_scale               # 'sage' mean (1/K) / 'gin' sum
            # Aggregation MLP.
            g = jnp.dot(pooled.astype(compute_dtype), w3,
                        preferred_element_type=jnp.float32) + b3
            g = jnp.maximum(g, 0.0)
            out = jnp.dot(g.astype(compute_dtype), w4,
                          preferred_element_type=jnp.float32) + b4
            # TODO(synk): optional sublane->lane repack of 8 node outputs per
            # 128-lane row for fully dense stores (dout=16 stores are masked,
            # but only ~1/8 of the input traffic, so left as-is for robustness).
            o_ref[pl.ds(ro, tr), :] = out.astype(o_ref.dtype)
            return carry

        lax.fori_loop(0, n_sub, sub_tile, 0)

    return kernel


# ----------------------------------------------------------------------------
# Wrapper
# ----------------------------------------------------------------------------
def hypernet_perm_equiv(feat_in, params, *, pool="sage",
                        node_tile=2048, sub_tile=128,
                        compute_dtype=jnp.bfloat16):
    """feat_in: (B, N, K, dim_in) float32.  Returns (B, N, dim_out) float32."""
    w1, b1, w2, b2, w3, b3, w4, b4 = params
    B, N, K, din = feat_in.shape
    dh = w1.shape[1]
    dout = w4.shape[1]
    M = B * N

    if pool == "sage":
        pool_scale = 1.0 / K        # mean over neighbours
    elif pool == "gin":
        pool_scale = 1.0            # sum over neighbours
    else:
        raise NotImplementedError(pool)

    # Tiling: tm node-groups per grid step (big, dense HBM DMA), tr rows per
    # in-kernel sub-tile (small, register-friendly).
    tr = sub_tile
    assert tr % 8 == 0, "sub_tile must be a multiple of 8 (sublane)"
    assert node_tile % tr == 0, "node_tile must be a multiple of sub_tile"
    tm = node_tile if M >= node_tile else _round_up(M, tr)
    n_sub = tm // tr
    Mp = _round_up(M, tm)

    # Lane-dense input: concatenate the K neighbour features along the lane
    # axis -> (M, K*din); for K*din == 128 this is exactly one full vreg row.
    x = feat_in.reshape(M, K * din).astype(compute_dtype)
    if Mp != M:
        x = jnp.pad(x, ((0, Mp - M), (0, 0)))       # zero rows, sliced off below

    w1c = w1.astype(compute_dtype)
    w2c = w2.astype(compute_dtype)
    w3c = w3.astype(compute_dtype)
    w4c = w4.astype(compute_dtype)
    # Biases stay f32; they are added to the f32 MXU accumulators.
    b1r = b1.reshape(1, dh).astype(jnp.float32)
    b2r = b2.reshape(1, dh).astype(jnp.float32)
    b3r = b3.reshape(1, dh).astype(jnp.float32)
    b4r = b4.reshape(1, dout).astype(jnp.float32)

    out_dtype = feat_in.dtype
    full = lambda i: (0, 0)   # weights / biases: one resident block

    flops = 2 * Mp * K * (din * dh + dh * dh) + 2 * Mp * (dh * dh + dh * dout)
    param_bytes = sum(int(a.size) * a.dtype.itemsize
                      for a in (w1c, w2c, w3c, w4c, b1r, b2r, b3r, b4r))
    bytes_accessed = (int(x.size) * x.dtype.itemsize
                      + Mp * dout * np.dtype(out_dtype).itemsize
                      + param_bytes)

    kernel = _make_kernel(K, din, dh, dout, tr, n_sub, pool_scale, compute_dtype)

    out_flat = pl.pallas_call(
        kernel,
        out_shape=jax.ShapeDtypeStruct((Mp, dout), out_dtype),
        grid_spec=pltpu.PrefetchScalarGridSpec(
            num_scalar_prefetch=0,
            grid=(Mp // tm,),
            in_specs=[
                pl.BlockSpec((tm, K * din), lambda i: (i, 0)),   # x rows (lane-dense)
                pl.BlockSpec((din, dh), full),                   # W1
                pl.BlockSpec((1, dh), full),                     # b1
                pl.BlockSpec((dh, dh), full),                    # W2
                pl.BlockSpec((1, dh), full),                     # b2
                pl.BlockSpec((dh, dh), full),                    # W3
                pl.BlockSpec((1, dh), full),                     # b3
                pl.BlockSpec((dh, dout), full),                  # W4
                pl.BlockSpec((1, dout), full),                   # b4
            ],
            out_specs=pl.BlockSpec((tm, dout), lambda i: (i, 0)),
        ),
        compiler_params=pltpu.CompilerParams(
            dimension_semantics=("parallel",)),
        cost_estimate=pl.CostEstimate(
            flops=int(flops), transcendentals=0,
            bytes_accessed=int(bytes_accessed)),
    )(x, w1c, b1r, w2c, b2r, w3c, b3r, w4c, b4r)

    return out_flat[:M].reshape(B, N, dout)


# ----------------------------------------------------------------------------
# Pure-JAX reference (mirrors the PyTorch forward exactly)
# ----------------------------------------------------------------------------
def reference_forward(feat_in, params, *, pool="sage"):
    w1, b1, w2, b2, w3, b3, w4, b4 = params
    h = jax.nn.relu(feat_in @ w1 + b1)          # split[0] + act
    h = h @ w2 + b2                             # split[-1]
    h = jax.nn.relu(h)                          # act before pooling
    h = h.mean(axis=2) if pool == "sage" else h.sum(axis=2)
    h = jax.nn.relu(h @ w3 + b3)                # aggr[0] + act
    return h @ w4 + b4                          # aggr[-1]


# ----------------------------------------------------------------------------
if __name__ == "__main__":
    # module config: dim_in=16, dim_out=16, dim_hid=32, n_hid=(1,1), pool='sage'
    B, N, K = 2, 32, 8
    dim_in, dim_hid, dim_out = 16, 32, 16

    key = jax.random.PRNGKey(0)
    keys = jax.random.split(key, 9)

    # weights stored as (in, out) == W.T of nn.Linear so x @ W + b == Linear(x)
    w1 = jax.random.normal(keys[0], (dim_in, dim_hid), jnp.float32) * 0.1
    b1 = jax.random.normal(keys[1], (dim_hid,), jnp.float32) * 0.1
    w2 = jax.random.normal(keys[2], (dim_hid, dim_hid), jnp.float32) * 0.1
    b2 = jax.random.normal(keys[3], (dim_hid,), jnp.float32) * 0.1
    w3 = jax.random.normal(keys[4], (dim_hid, dim_hid), jnp.float32) * 0.1
    b3 = jax.random.normal(keys[5], (dim_hid,), jnp.float32) * 0.1
    w4 = jax.random.normal(keys[6], (dim_hid, dim_out), jnp.float32) * 0.1
    b4 = jax.random.normal(keys[7], (dim_out,), jnp.float32) * 0.1
    params = (w1, b1, w2, b2, w3, b3, w4, b4)

    feat_in = jax.random.normal(keys[8], (B, N, K, dim_in), jnp.float32)
    ref = reference_forward(feat_in, params, pool="sage")

    # 1) f32 operands, default (large) tiling -- tight correctness check.
    out_f32 = hypernet_perm_equiv(feat_in, params, pool="sage",
                                  compute_dtype=jnp.float32)
    out_f32 = jax.block_until_ready(out_f32)
    assert out_f32.shape == (B, N, dim_out)
    np.testing.assert_allclose(np.asarray(out_f32), np.asarray(ref),
                               rtol=1e-5, atol=1e-5)

    # 2) f32 operands, small tiles -> multi-step grid + multi-sub-tile loop.
    out_small = hypernet_perm_equiv(feat_in, params, pool="sage",
                                    node_tile=32, sub_tile=16,
                                    compute_dtype=jnp.float32)
    out_small = jax.block_until_ready(out_small)
    np.testing.assert_allclose(np.asarray(out_small), np.asarray(ref),
                               rtol=1e-5, atol=1e-5)

    # 3) bf16 operands with f32 accumulation -- the fast path on v6e/v7x.
    out_bf16 = hypernet_perm_equiv(feat_in, params, pool="sage",
                                   compute_dtype=jnp.bfloat16)
    out_bf16 = jax.block_until_ready(out_bf16)
    np.testing.assert_allclose(np.asarray(out_bf16), np.asarray(ref),
                               rtol=5e-2, atol=1e-2)

    print("KERNEL_OK")
</pallas_src>

<mosaic_0001>
module attributes {stable_mosaic.version = 11 : i64} {
  func.func @kernel(%arg0: i32, %arg1: memref<128x128xf32, #tpu.memory_space<vmem>>, %arg2: memref<16x32xf32, #tpu.memory_space<vmem>>, %arg3: memref<1x32xf32, #tpu.memory_space<vmem>>, %arg4: memref<32x32xf32, #tpu.memory_space<vmem>>, %arg5: memref<1x32xf32, #tpu.memory_space<vmem>>, %arg6: memref<32x32xf32, #tpu.memory_space<vmem>>, %arg7: memref<1x32xf32, #tpu.memory_space<vmem>>, %arg8: memref<32x16xf32, #tpu.memory_space<vmem>>, %arg9: memref<1x16xf32, #tpu.memory_space<vmem>>, %arg10: memref<128x16xf32, #tpu.memory_space<vmem>>) attributes {dimension_semantics = [#tpu.dimension_semantics<parallel>], iteration_bounds = array<i64: 1>, scalar_prefetch = 0 : i64, scratch_operands = 0 : i64, tpu.core_type = #tpu.core_type<tc>, window_params = [{transform_indices = @transform_0, window_bounds = array<i64: 128, 128>}, {pipeline_mode = #tpu.pipeline_mode<synchronous>, transform_indices = @transform_1, window_bounds = array<i64: 16, 32>}, {pipeline_mode = #tpu.pipeline_mode<synchronous>, transform_indices = @transform_2, window_bounds = array<i64: 1, 32>}, {pipeline_mode = #tpu.pipeline_mode<synchronous>, transform_indices = @transform_3, window_bounds = array<i64: 32, 32>}, {pipeline_mode = #tpu.pipeline_mode<synchronous>, transform_indices = @transform_4, window_bounds = array<i64: 1, 32>}, {pipeline_mode = #tpu.pipeline_mode<synchronous>, transform_indices = @transform_5, window_bounds = array<i64: 32, 32>}, {pipeline_mode = #tpu.pipeline_mode<synchronous>, transform_indices = @transform_6, window_bounds = array<i64: 1, 32>}, {pipeline_mode = #tpu.pipeline_mode<synchronous>, transform_indices = @transform_7, window_bounds = array<i64: 32, 16>}, {pipeline_mode = #tpu.pipeline_mode<synchronous>, transform_indices = @transform_8, window_bounds = array<i64: 1, 16>}, {transform_indices = @transform_9, window_bounds = array<i64: 128, 16>}]} {
    %c0 = arith.constant 0 : index
    %c0_0 = arith.constant 0 : index
    %0 = vector.load %arg2[%c0, %c0_0] : memref<16x32xf32, #tpu.memory_space<vmem>>, vector<16x32xf32>
    %c0_1 = arith.constant 0 : index
    %c0_2 = arith.constant 0 : index
    %1 = vector.load %arg4[%c0_1, %c0_2] : memref<32x32xf32, #tpu.memory_space<vmem>>, vector<32x32xf32>
    %c0_3 = arith.constant 0 : index
    %c0_4 = arith.constant 0 : index
    %2 = vector.load %arg6[%c0_3, %c0_4] : memref<32x32xf32, #tpu.memory_space<vmem>>, vector<32x32xf32>
    %c0_5 = arith.constant 0 : index
    %c0_6 = arith.constant 0 : index
    %3 = vector.load %arg8[%c0_5, %c0_6] : memref<32x16xf32, #tpu.memory_space<vmem>>, vector<32x16xf32>
    %c0_7 = arith.constant 0 : index
    %c0_8 = arith.constant 0 : index
    %4 = vector.load %arg3[%c0_7, %c0_8] : memref<1x32xf32, #tpu.memory_space<vmem>>, vector<1x32xf32>
    %c0_9 = arith.constant 0 : index
    %c0_10 = arith.constant 0 : index
    %5 = vector.load %arg5[%c0_9, %c0_10] : memref<1x32xf32, #tpu.memory_space<vmem>>, vector<1x32xf32>
    %c0_11 = arith.constant 0 : index
    %c0_12 = arith.constant 0 : index
    %6 = vector.load %arg7[%c0_11, %c0_12] : memref<1x32xf32, #tpu.memory_space<vmem>>, vector<1x32xf32>
    %c0_13 = arith.constant 0 : index
    %c0_14 = arith.constant 0 : index
    %7 = vector.load %arg9[%c0_13, %c0_14] : memref<1x16xf32, #tpu.memory_space<vmem>>, vector<1x16xf32>
    %c0_i32 = arith.constant 0 : i32
    %c128_i32 = arith.constant 128 : i32
    %8 = arith.muli %c0_i32, %c128_i32 : i32
    %9 = tpu.assume_multiple %8, 128 : i32
    %cst = arith.constant 0.000000e+00 : f32
    %10 = vector.broadcast %cst : f32 to vector<128x32xf32>
    %11 = arith.index_cast %9 : i32 to index
    %c0_15 = arith.constant 0 : index
    %12 = vector.load %arg1[%11, %c0_15] : memref<128x128xf32, #tpu.memory_space<vmem>>, vector<128x16xf32>
    %cst_16 = arith.constant dense<0.000000e+00> : vector<128x32xf32>
    %13 = tpu.matmul %12, %0, %cst_16 {dimension_numbers = #tpu.dot_dimension_numbers<[1], [0], [0], [1], [0, 0, 1, 1], [], []>} : vector<128x16xf32>, vector<16x32xf32>, vector<128x32xf32> -> vector<128x32xf32>
    %14 = vector.broadcast %4 : vector<1x32xf32> to vector<128x32xf32>
    %15 = arith.addf %13, %14 : vector<128x32xf32>
    %cst_17 = arith.constant 0.000000e+00 : f32
    %16 = vector.broadcast %cst_17 : f32 to vector<128x32xf32>
    %17 = arith.maximumf %15, %16 : vector<128x32xf32>
    %cst_18 = arith.constant dense<0.000000e+00> : vector<128x32xf32>
    %18 = tpu.matmul %17, %1, %cst_18 {dimension_numbers = #tpu.dot_dimension_numbers<[1], [0], [0], [1], [0, 0, 1, 1], [], []>} : vector<128x32xf32>, vector<32x32xf32>, vector<128x32xf32> -> vector<128x32xf32>
    %19 = vector.broadcast %5 : vector<1x32xf32> to vector<128x32xf32>
    %20 = arith.addf %18, %19 : vector<128x32xf32>
    %cst_19 = arith.constant 0.000000e+00 : f32
    %21 = vector.broadcast %cst_19 : f32 to vector<128x32xf32>
    %22 = arith.maximumf %20, %21 : vector<128x32xf32>
    %23 = arith.addf %10, %22 : vector<128x32xf32>
    %24 = arith.index_cast %9 : i32 to index
    %c16 = arith.constant 16 : index
    %25 = vector.load %arg1[%24, %c16] : memref<128x128xf32, #tpu.memory_space<vmem>>, vector<128x16xf32>
    %cst_20 = arith.constant dense<0.000000e+00> : vector<128x32xf32>
    %26 = tpu.matmul %25, %0, %cst_20 {dimension_numbers = #tpu.dot_dimension_numbers<[1], [0], [0], [1], [0, 0, 1, 1], [], []>} : vector<128x16xf32>, vector<16x32xf32>, vector<128x32xf32> -> vector<128x32xf32>
    %27 = vector.broadcast %4 : vector<1x32xf32> to vector<128x32xf32>
    %28 = arith.addf %26, %27 : vector<128x32xf32>
    %cst_21 = arith.constant 0.000000e+00 : f32
    %29 = vector.broadcast %cst_21 : f32 to vector<128x32xf32>
    %30 = arith.maximumf %28, %29 : vector<128x32xf32>
    %cst_22 = arith.constant dense<0.000000e+00> : vector<128x32xf32>
    %31 = tpu.matmul %30, %1, %cst_22 {dimension_numbers = #tpu.dot_dimension_numbers<[1], [0], [0], [1], [0, 0, 1, 1], [], []>} : vector<128x32xf32>, vector<32x32xf32>, vector<128x32xf32> -> vector<128x32xf32>
    %32 = vector.broadcast %5 : vector<1x32xf32> to vector<128x32xf32>
    %33 = arith.addf %31, %32 : vector<128x32xf32>
    %cst_23 = arith.constant 0.000000e+00 : f32
    %34 = vector.broadcast %cst_23 : f32 to vector<128x32xf32>
    %35 = arith.maximumf %33, %34 : vector<128x32xf32>
    %36 = arith.addf %23, %35 : vector<128x32xf32>
    %37 = arith.index_cast %9 : i32 to index
    %c32 = arith.constant 32 : index
    %38 = vector.load %arg1[%37, %c32] : memref<128x128xf32, #tpu.memory_space<vmem>>, vector<128x16xf32>
    %cst_24 = arith.constant dense<0.000000e+00> : vector<128x32xf32>
    %39 = tpu.matmul %38, %0, %cst_24 {dimension_numbers = #tpu.dot_dimension_numbers<[1], [0], [0], [1], [0, 0, 1, 1], [], []>} : vector<128x16xf32>, vector<16x32xf32>, vector<128x32xf32> -> vector<128x32xf32>
    %40 = vector.broadcast %4 : vector<1x32xf32> to vector<128x32xf32>
    %41 = arith.addf %39, %40 : vector<128x32xf32>
    %cst_25 = arith.constant 0.000000e+00 : f32
    %42 = vector.broadcast %cst_25 : f32 to vector<128x32xf32>
    %43 = arith.maximumf %41, %42 : vector<128x32xf32>
    %cst_26 = arith.constant dense<0.000000e+00> : vector<128x32xf32>
    %44 = tpu.matmul %43, %1, %cst_26 {dimension_numbers = #tpu.dot_dimension_numbers<[1], [0], [0], [1], [0, 0, 1, 1], [], []>} : vector<128x32xf32>, vector<32x32xf32>, vector<128x32xf32> -> vector<128x32xf32>
    %45 = vector.broadcast %5 : vector<1x32xf32> to vector<128x32xf32>
    %46 = arith.addf %44, %45 : vector<128x32xf32>
    %cst_27 = arith.constant 0.000000e+00 : f32
    %47 = vector.broadcast %cst_27 : f32 to vector<128x32xf32>
    %48 = arith.maximumf %46, %47 : vector<128x32xf32>
    %49 = arith.addf %36, %48 : vector<128x32xf32>
    %50 = arith.index_cast %9 : i32 to index
    %c48 = arith.constant 48 : index
    %51 = vector.load %arg1[%50, %c48] : memref<128x128xf32, #tpu.memory_space<vmem>>, vector<128x16xf32>
    %cst_28 = arith.constant dense<0.000000e+00> : vector<128x32xf32>
    %52 = tpu.matmul %51, %0, %cst_28 {dimension_numbers = #tpu.dot_dimension_numbers<[1], [0], [0], [1], [0, 0, 1, 1], [], []>} : vector<128x16xf32>, vector<16x32xf32>, vector<128x32xf32> -> vector<128x32xf32>
    %53 = vector.broadcast %4 : vector<1x32xf32> to vector<128x32xf32>
    %54 = arith.addf %52, %53 : vector<128x32xf32>
    %cst_29 = arith.constant 0.000000e+00 : f32
    %55 = vector.broadcast %cst_29 : f32 to vector<128x32xf32>
    %56 = arith.maximumf %54, %55 : vector<128x32xf32>
    %cst_30 = arith.constant dense<0.000000e+00> : vector<128x32xf32>
    %57 = tpu.matmul %56, %1, %cst_30 {dimension_numbers = #tpu.dot_dimension_numbers<[1], [0], [0], [1], [0, 0, 1, 1], [], []>} : vector<128x32xf32>, vector<32x32xf32>, vector<128x32xf32> -> vector<128x32xf32>
    %58 = vector.broadcast %5 : vector<1x32xf32> to vector<128x32xf32>
    %59 = arith.addf %57, %58 : vector<128x32xf32>
    %cst_31 = arith.constant 0.000000e+00 : f32
    %60 = vector.broadcast %cst_31 : f32 to vector<128x32xf32>
    %61 = arith.maximumf %59, %60 : vector<128x32xf32>
    %62 = arith.addf %49, %61 : vector<128x32xf32>
    %63 = arith.index_cast %9 : i32 to index
    %c64 = arith.constant 64 : index
    %64 = vector.load %arg1[%63, %c64] : memref<128x128xf32, #tpu.memory_space<vmem>>, vector<128x16xf32>
    %cst_32 = arith.constant dense<0.000000e+00> : vector<128x32xf32>
    %65 = tpu.matmul %64, %0, %cst_32 {dimension_numbers = #tpu.dot_dimension_numbers<[1], [0], [0], [1], [0, 0, 1, 1], [], []>} : vector<128x16xf32>, vector<16x32xf32>, vector<128x32xf32> -> vector<128x32xf32>
    %66 = vector.broadcast %4 : vector<1x32xf32> to vector<128x32xf32>
    %67 = arith.addf %65, %66 : vector<128x32xf32>
    %cst_33 = arith.constant 0.000000e+00 : f32
    %68 = vector.broadcast %cst_33 : f32 to vector<128x32xf32>
    %69 = arith.maximumf %67, %68 : vector<128x32xf32>
    %cst_34 = arith.constant dense<0.000000e+00> : vector<128x32xf32>
    %70 = tpu.matmul %69, %1, %cst_34 {dimension_numbers = #tpu.dot_dimension_numbers<[1], [0], [0], [1], [0, 0, 1, 1], [], []>} : vector<128x32xf32>, vector<32x32xf32>, vector<128x32xf32> -> vector<128x32xf32>
    %71 = vector.broadcast %5 : vector<1x32xf32> to vector<128x32xf32>
    %72 = arith.addf %70, %71 : vector<128x32xf32>
    %cst_35 = arith.constant 0.000000e+00 : f32
    %73 = vector.broadcast %cst_35 : f32 to vector<128x32xf32>
    %74 = arith.maximumf %72, %73 : vector<128x32xf32>
    %75 = arith.addf %62, %74 : vector<128x32xf32>
    %76 = arith.index_cast %9 : i32 to index
    %c80 = arith.constant 80 : index
    %77 = vector.load %arg1[%76, %c80] : memref<128x128xf32, #tpu.memory_space<vmem>>, vector<128x16xf32>
    %cst_36 = arith.constant dense<0.000000e+00> : vector<128x32xf32>
    %78 = tpu.matmul %77, %0, %cst_36 {dimension_numbers = #tpu.dot_dimension_numbers<[1], [0], [0], [1], [0, 0, 1, 1], [], []>} : vector<128x16xf32>, vector<16x32xf32>, vector<128x32xf32> -> vector<128x32xf32>
    %79 = vector.broadcast %4 : vector<1x32xf32> to vector<128x32xf32>
    %80 = arith.addf %78, %79 : vector<128x32xf32>
    %cst_37 = arith.constant 0.000000e+00 : f32
    %81 = vector.broadcast %cst_37 : f32 to vector<128x32xf32>
    %82 = arith.maximumf %80, %81 : vector<128x32xf32>
    %cst_38 = arith.constant dense<0.000000e+00> : vector<128x32xf32>
    %83 = tpu.matmul %82, %1, %cst_38 {dimension_numbers = #tpu.dot_dimension_numbers<[1], [0], [0], [1], [0, 0, 1, 1], [], []>} : vector<128x32xf32>, vector<32x32xf32>, vector<128x32xf32> -> vector<128x32xf32>
    %84 = vector.broadcast %5 : vector<1x32xf32> to vector<128x32xf32>
    %85 = arith.addf %83, %84 : vector<128x32xf32>
    %cst_39 = arith.constant 0.000000e+00 : f32
    %86 = vector.broadcast %cst_39 : f32 to vector<128x32xf32>
    %87 = arith.maximumf %85, %86 : vector<128x32xf32>
    %88 = arith.addf %75, %87 : vector<128x32xf32>
    %89 = arith.index_cast %9 : i32 to index
    %c96 = arith.constant 96 : index
    %90 = vector.load %arg1[%89, %c96] : memref<128x128xf32, #tpu.memory_space<vmem>>, vector<128x16xf32>
    %cst_40 = arith.constant dense<0.000000e+00> : vector<128x32xf32>
    %91 = tpu.matmul %90, %0, %cst_40 {dimension_numbers = #tpu.dot_dimension_numbers<[1], [0], [0], [1], [0, 0, 1, 1], [], []>} : vector<128x16xf32>, vector<16x32xf32>, vector<128x32xf32> -> vector<128x32xf32>
    %92 = vector.broadcast %4 : vector<1x32xf32> to vector<128x32xf32>
    %93 = arith.addf %91, %92 : vector<128x32xf32>
    %cst_41 = arith.constant 0.000000e+00 : f32
    %94 = vector.broadcast %cst_41 : f32 to vector<128x32xf32>
    %95 = arith.maximumf %93, %94 : vector<128x32xf32>
    %cst_42 = arith.constant dense<0.000000e+00> : vector<128x32xf32>
    %96 = tpu.matmul %95, %1, %cst_42 {dimension_numbers = #tpu.dot_dimension_numbers<[1], [0], [0], [1], [0, 0, 1, 1], [], []>} : vector<128x32xf32>, vector<32x32xf32>, vector<128x32xf32> -> vector<128x32xf32>
    %97 = vector.broadcast %5 : vector<1x32xf32> to vector<128x32xf32>
    %98 = arith.addf %96, %97 : vector<128x32xf32>
    %cst_43 = arith.constant 0.000000e+00 : f32
    %99 = vector.broadcast %cst_43 : f32 to vector<128x32xf32>
    %100 = arith.maximumf %98, %99 : vector<128x32xf32>
    %101 = arith.addf %88, %100 : vector<128x32xf32>
    %102 = arith.index_cast %9 : i32 to index
    %c112 = arith.constant 112 : index
    %103 = vector.load %arg1[%102, %c112] : memref<128x128xf32, #tpu.memory_space<vmem>>, vector<128x16xf32>
    %cst_44 = arith.constant dense<0.000000e+00> : vector<128x32xf32>
    %104 = tpu.matmul %103, %0, %cst_44 {dimension_numbers = #tpu.dot_dimension_numbers<[1], [0], [0], [1], [0, 0, 1, 1], [], []>} : vector<128x16xf32>, vector<16x32xf32>, vector<128x32xf32> -> vector<128x32xf32>
    %105 = vector.broadcast %4 : vector<1x32xf32> to vector<128x32xf32>
    %106 = arith.addf %104, %105 : vector<128x32xf32>
    %cst_45 = arith.constant 0.000000e+00 : f32
    %107 = vector.broadcast %cst_45 : f32 to vector<128x32xf32>
    %108 = arith.maximumf %106, %107 : vector<128x32xf32>
    %cst_46 = arith.constant dense<0.000000e+00> : vector<128x32xf32>
    %109 = tpu.matmul %108, %1, %cst_46 {dimension_numbers = #tpu.dot_dimension_numbers<[1], [0], [0], [1], [0, 0, 1, 1], [], []>} : vector<128x32xf32>, vector<32x32xf32>, vector<128x32xf32> -> vector<128x32xf32>
    %110 = vector.broadcast %5 : vector<1x32xf32> to vector<128x32xf32>
    %111 = arith.addf %109, %110 : vector<128x32xf32>
    %cst_47 = arith.constant 0.000000e+00 : f32
    %112 = vector.broadcast %cst_47 : f32 to vector<128x32xf32>
    %113 = arith.maximumf %111, %112 : vector<128x32xf32>
    %114 = arith.addf %101, %113 : vector<128x32xf32>
    %cst_48 = arith.constant 1.250000e-01 : f32
    %115 = vector.broadcast %cst_48 : f32 to vector<128x32xf32>
    %116 = arith.mulf %114, %115 : vector<128x32xf32>
    %cst_49 = arith.constant dense<0.000000e+00> : vector<128x32xf32>
    %117 = tpu.matmul %116, %2, %cst_49 {dimension_numbers = #tpu.dot_dimension_numbers<[1], [0], [0], [1], [0, 0, 1, 1], [], []>} : vector<128x32xf32>, vector<32x32xf32>, vector<128x32xf32> -> vector<128x32xf32>
    %118 = vector.broadcast %6 : vector<1x32xf32> to vector<128x32xf32>
    %119 = arith.addf %117, %118 : vector<128x32xf32>
    %cst_50 = arith.constant 0.000000e+00 : f32
    %120 = vector.broadcast %cst_50 : f32 to vector<128x32xf32>
    %121 = arith.maximumf %119, %120 : vector<128x32xf32>
    %cst_51 = arith.constant dense<0.000000e+00> : vector<128x16xf32>
    %122 = tpu.matmul %121, %3, %cst_51 {dimension_numbers = #tpu.dot_dimension_numbers<[1], [0], [0], [1], [0, 0, 1, 1], [], []>} : vector<128x32xf32>, vector<32x16xf32>, vector<128x16xf32> -> vector<128x16xf32>
    %123 = vector.broadcast %7 : vector<1x16xf32> to vector<128x16xf32>
    %124 = arith.addf %122, %123 : vector<128x16xf32>
    %125 = arith.index_cast %9 : i32 to index
    %c0_52 = arith.constant 0 : index
    %126 = vector.load %arg10[%125, %c0_52] : memref<128x16xf32, #tpu.memory_space<vmem>>, vector<128x16xf32>
    tpu.vector_store %arg10[%125, %c0_52], %124 {strides = array<i32>} : memref<128x16xf32, #tpu.memory_space<vmem>>, vector<128x16xf32>,
    %c1_i32 = arith.constant 1 : i32
    return
  }
  func.func @transform_0(%arg0: i32) -> (i32, i32) {
    %c0_i32 = arith.constant 0 : i32
    %c0_i32_0 = arith.constant 0 : i32
    return %arg0, %c0_i32 : i32, i32
  }
  func.func @transform_1(%arg0: i32) -> (i32, i32) {
    %c0_i32 = arith.constant 0 : i32
    %c0_i32_0 = arith.constant 0 : i32
    %c0_i32_1 = arith.constant 0 : i32
    return %c0_i32, %c0_i32_0 : i32, i32
  }
  func.func @transform_2(%arg0: i32) -> (i32, i32) {
    %c0_i32 = arith.constant 0 : i32
    %c0_i32_0 = arith.constant 0 : i32
    %c0_i32_1 = arith.constant 0 : i32
    return %c0_i32, %c0_i32_0 : i32, i32
  }
  func.func @transform_3(%arg0: i32) -> (i32, i32) {
    %c0_i32 = arith.constant 0 : i32
    %c0_i32_0 = arith.constant 0 : i32
    %c0_i32_1 = arith.constant 0 : i32
    return %c0_i32, %c0_i32_0 : i32, i32
  }
  func.func @transform_4(%arg0: i32) -> (i32, i32) {
    %c0_i32 = arith.constant 0 : i32
    %c0_i32_0 = arith.constant 0 : i32
    %c0_i32_1 = arith.constant 0 : i32
    return %c0_i32, %c0_i32_0 : i32, i32
  }
  func.func @transform_5(%arg0: i32) -> (i32, i32) {
    %c0_i32 = arith.constant 0 : i32
    %c0_i32_0 = arith.constant 0 : i32
    %c0_i32_1 = arith.constant 0 : i32
    return %c0_i32, %c0_i32_0 : i32, i32
  }
  func.func @transform_6(%arg0: i32) -> (i32, i32) {
    %c0_i32 = arith.constant 0 : i32
    %c0_i32_0 = arith.constant 0 : i32
    %c0_i32_1 = arith.constant 0 : i32
    return %c0_i32, %c0_i32_0 : i32, i32
  }
  func.func @transform_7(%arg0: i32) -> (i32, i32) {
    %c0_i32 = arith.constant 0 : i32
    %c0_i32_0 = arith.constant 0 : i32
    %c0_i32_1 = arith.constant 0 : i32
    return %c0_i32, %c0_i32_0 : i32, i32
  }
  func.func @transform_8(%arg0: i32) -> (i32, i32) {
    %c0_i32 = arith.constant 0 : i32
    %c0_i32_0 = arith.constant 0 : i32
    %c0_i32_1 = arith.constant 0 : i32
    return %c0_i32, %c0_i32_0 : i32, i32
  }
  func.func @transform_9(%arg0: i32) -> (i32, i32) {
    %c0_i32 = arith.constant 0 : i32
    %c0_i32_0 = arith.constant 0 : i32
    return %arg0, %c0_i32 : i32, i32
  }
}

</mosaic_0001>

<bundles_post_ra>
// kernel: tpu_custom_call.1
= control target key start
LH: loop header
LB: loop body
LE: loop exit
PB: predicated region body
PF: predicated region fallthrough
CT: control target
= control target key end

     0   :  { %14 = vsyncpa [#allocation3], 0  ;;  %s4538_s0 = inlined_call_operand.hbm [shape: f32[128,128], index: 0, kind: input, shape index: {}]   ;;  %s4539_s1 = inlined_call_operand.vmem [shape: f32[16,32], index: 1, kind: input, shape index: {}]   ;;  %s4540_s2 = inlined_call_operand.vmem [shape: f32[1,32], index: 2, kind: input, shape index: {}]   ;;  %s4541_s3 = inlined_call_operand.vmem [shape: f32[32,32], index: 3, kind: input, shape index: {}]   ;;  %s4542_s4 = inlined_call_operand.vmem [shape: f32[1,32], index: 4, kind: input, shape index: {}]   ;;  %s4543_s5 = inlined_call_operand.hbm [shape: f32[32,32], index: 5, kind: input, shape index: {}]   ;;  %s4544_s6 = inlined_call_operand.vmem [shape: f32[1,32], index: 6, kind: input, shape index: {}]   ;;  %s4545_s7 = inlined_call_operand.vmem [shape: f32[32,16], index: 7, kind: input, shape index: {}]   ;;  %s4546_s8 = inlined_call_operand.vmem [shape: f32[1,16], index: 8, kind: input, shape index: {}]   ;;  %s4547_s9 = inlined_call_operand.vmem [shape: f32[128,16], index: 9, kind: output, shape index: {}]  }
   0x1   :  { %s20_s11 = sshll.u32 %s4538_s0, 4  ;;  %s21_s11 = int_to_ptr.hbm [resolvable:$true] %s20_s11 }
   0x2   :  { %15 = vsyncpa [#allocation5], 0  ;;  %s3058_s12 = smov [#allocation2]   ;;  %s41_s16 = sshll.u32 %s4543_s5, 4  ;;  %s42_s16 = int_to_ptr.hbm [resolvable:$true] %s41_s16 }
   0x3   :  { %s22_s13 = sshll.u32 %s3058_s12, 4  ;;  %s3059_s17 = smov 128   ;;  %s23_s13 = int_to_ptr.vmem [resolvable:$true] %s22_s13 }
   0x4   :  { %s3060_s18 = smov 8   ;;  %s3061_s19 = smov [#allocation4]  }
   0x5   :  { %28 = dma.hbm_to_vmem [thread:$0]  %s21_s11, 2048, %s23_s13, [#allocation3], %s3059_s17, %s3059_s17, %s3060_s18  }
   0x6   :  { %s43_s20 = sshll.u32 %s3061_s19, 4  ;;  %s44_s20 = int_to_ptr.vmem [resolvable:$true] %s43_s20 }
   0x7   :  { %49 = dma.hbm_to_vmem [thread:$0]  %s42_s16, 512, %s44_s20, [#allocation5], %s3059_s17, %s3059_s17, %s3060_s18  }
   0x8   :  { %3054 = dma.done.wait [#allocation3], 2048  }
   0x9   :  { %3055 = vsyncadd [#allocation3], 4294965248 }
   0xa   :  { %3056 = dma.done.wait [#allocation5], 512  }
   0xb   :  { %3057 = vsyncadd [#allocation5], 4294966784  ;;  %v3125_v0 = vld [vmem:[#allocation2 + $0x10] sm:$0xff]  ;;  %v3127_v1 = vld [vmem:[#allocation2] sm:$0xff]  ;;  %s3062_s0 = smov 112   ;;  %vm101_vm0 = vcmask 130048  }
   0xc   :  { %384 = vrot.lane.b32.xlu1 %v3125_v0, %s3062_s0  ;;  %380 = vrot.lane.b32.xlu0 %v3127_v1, %s3062_s0  ;;  %v3136_v2 = vld [vmem:[%s4539_s1 + $0x8] sm:$0xff]  ;;  %v3141_v3 = vld [vmem:[%s4539_s1] sm:$0xff]  ;;  %v3155_v5 = vld [vmem:[#allocation2 + $0x18] sm:$0xff]  ;;  %s3063_s27 = smov 96   ;;  %s3064_s28 = smov 80   ;;  %vm234_vm1 = vcmask 261120  }
   0xd   :  { %164 = vmatpush.msra.mxu0 %v3136_v2  ;;  %2984 = vmatpush.msra.mxu1 %v3136_v2  ;;  %v3145_v4 = vld [vmem:[#allocation2 + $0x20] sm:$0xff]  ;;  %v3157_v6 = vld [vmem:[#allocation2 + $0x8] sm:$0xff]  ;;  %v3177_v9 = vld [vmem:[#allocation2 + $0x38] sm:$0xff]  ;;  %s3065_s13 = smov 64   ;;  %s3066_s14 = smov 48  }
   0xe   :  { %458 = vmatpush.msra.mxu2 %v3136_v2  ;;  %2986 = vmatpush.msra.mxu3 %v3136_v2  ;;  %v3167_v7 = vld [vmem:[#allocation2 + $0x28] sm:$0xff]  ;;  %v3175_v8 = vld [vmem:[#allocation2 + $0x40] sm:$0xff]  ;;  %v3179_v10 = vld [vmem:[#allocation2 + $0x30] sm:$0xff]  ;;  %s3067_s15 = smov 32   ;;  %s3068_s16 = smov 16  }
   0xf   :  { %165 = vmatpush.msra.mxu0 %v3141_v3  ;;  %388 = vrot.lane.b32.xlu2 %v3145_v4, %s3062_s0  ;;  %v3191_v11 = vld [vmem:[#allocation2 + $0x48] sm:$0xff]  ;;  %v3193_v12 = vld [vmem:[#allocation2 + $0x50] sm:$0xff]  ;;  %v3201_v13 = vld [vmem:[#allocation2 + $0x58] sm:$0xff] }
  0x10   :  { %2696 = vmatmul.msk.f32.vlgmr.msra.gmra.mxu0 %vm101_vm0, %v3127_v1  ;;  %2985 = vmatpush.msra.mxu1 %v3141_v3  ;;  %v3210_v14 = vld [vmem:[%s4541_s3 + $0x18] sm:$0xff]  ;;  %v3212_v15 = vld [vmem:[#allocation2 + $0x68] sm:$0xff]  ;;  %v3214_v16 = vld [vmem:[#allocation2 + $0x60] sm:$0xff] }
  0x11   :  { %459 = vmatpush.msra.mxu2 %v3141_v3  ;;  %748 = vmatpush.msrb.mxu0 %v3136_v2  ;;  %v3225_v17 = vld [vmem:[#allocation2 + $0x70] sm:$0xff]  ;;  %v3239_v19 = vld [vmem:[#allocation2 + $0x78] sm:$0xff]  ;;  %v3260_v20 = vld [vmem:[%s4541_s3 + $0x8] sm:$0xff] }
  0x12   :  { %2987 = vmatpush.msra.mxu3 %v3141_v3  ;;  %2704 = vmatmul.msk.f32.vlgmr.msra.gmra.mxu1 %vm101_vm0, %v3175_v8  ;;  %v3230_v18 = vld [vmem:[%s4541_s3 + $0x10] sm:$0xff]  ;;  %v3302_v21 = vld [vmem:[%s4541_s3] sm:$0xff] }
  0x13   :  { %749 = vmatpush.msrb.mxu0 %v3141_v3  ;;  %295 = vmatpush.msrb.mxu1 %v3210_v14  ;;  %v3359_v29 = vld [vmem:[%s4540_s2] ss:$0 sm:$0xff] }
  0x14   :  { %386 = vrot.lane.b32.xlu1 %v3155_v5, %s3062_s0  ;;  %382 = vrot.lane.b32.xlu0 %v3157_v6, %s3062_s0 }
  0x15   :  { %1328 = vmatpush.msra.mxu0 %v3136_v2  ;;  %585 = vmatpush.msrb.mxu3 %v3210_v14 }
  0x16   :  { %875 = vmatpush.msrb.mxu2 %v3210_v14  ;;  %296 = vmatpush.msrb.mxu1 %v3230_v18 }
  0x17   :  { %390 = vrot.lane.b32.xlu2 %v3167_v7, %s3062_s0  ;;  %1329 = vmatpush.msra.mxu0 %v3141_v3 }
  0x18   :  { %2697 = vmatmul.msk.f32.gmra.mxu0 %vm101_vm0, %v3157_v6  ;;  %586 = vmatpush.msrb.mxu3 %v3230_v18 }
  0x19   :  { %876 = vmatpush.msrb.mxu2 %v3230_v18  ;;  %297 = vmatpush.msrb.mxu1 %v3260_v20 }
  0x1a   :  { %2705 = vmatmul.msk.f32.gmra.mxu1 %vm101_vm0, %v3191_v11  ;;  %587 = vmatpush.msrb.mxu3 %v3260_v20 }
  0x1b   :  { %877 = vmatpush.msrb.mxu2 %v3260_v20  ;;  %298 = vmatpush.msrb.mxu1 %v3302_v21 }
  0x1c   :  { %394 = vrot.lane.b32.xlu1 %v3177_v9, %s3062_s0  ;;  %392 = vrot.lane.b32.xlu0 %v3179_v10, %s3062_s0 }
  0x1d   :  { %588 = vmatpush.msrb.mxu3 %v3302_v21  ;;  %1038 = vmatpush.msra.mxu1 %v3136_v2 }
  0x1e   :  { %878 = vmatpush.msrb.mxu2 %v3302_v21 }
  0x1f   :  { %396 = vrot.lane.b32.xlu2 %v3175_v8, %s3062_s0  ;;  %1039 = vmatpush.msra.mxu1 %v3141_v3 }
  0x20   :  { %2698 = vmatmul.msk.f32.gmra.mxu0 %vm101_vm0, %v3125_v0 }
  0x22   :  { %2706 = vmatmul.msk.f32.gmra.mxu1 %vm101_vm0, %v3193_v12 }
  0x24   :  { %400 = vrot.lane.b32.xlu1 %v3193_v12, %s3062_s0  ;;  %398 = vrot.lane.b32.xlu0 %v3191_v11, %s3062_s0 }
  0x27   :  { %402 = vrot.lane.b32.xlu2 %v3201_v13, %s3062_s0 }
  0x28   :  { %2699 = vmatmul.msk.f32.gmra.mxu0 %vm101_vm0, %v3155_v5 }
  0x2a   :  { %2707 = vmatmul.msk.f32.gmra.mxu1 %vm101_vm0, %v3201_v13 }
  0x2c   :  { %406 = vrot.lane.b32.xlu1 %v3212_v15, %s3062_s0  ;;  %404 = vrot.lane.b32.xlu0 %v3214_v16, %s3062_s0 }
  0x2f   :  { %408 = vrot.lane.b32.xlu2 %v3225_v17, %s3062_s0 }
  0x30   :  { %2700 = vmatmul.msk.f32.gmra.mxu0 %vm101_vm0, %v3145_v4 }
  0x32   :  { %2708 = vmatmul.msk.f32.gmra.mxu1 %vm101_vm0, %v3214_v16 }
  0x34   :  { %670 = vrot.lane.b32.xlu1 %v3127_v1, %s3063_s27  ;;  %410 = vrot.lane.b32.xlu0 %v3239_v19, %s3062_s0 }
  0x37   :  { %960 = vrot.lane.b32.xlu2 %v3127_v1, %s3064_s28 }
  0x38   :  { %2701 = vmatmul.msk.f32.gmra.mxu0 %vm101_vm0, %v3167_v7 }
  0x3a   :  { %2709 = vmatmul.msk.f32.gmra.mxu1 %vm101_vm0, %v3212_v15 }
  0x3c   :  { %672 = vrot.lane.b32.xlu0 %v3157_v6, %s3063_s27  ;;  %962 = vrot.lane.b32.xlu1 %v3157_v6, %s3064_s28 }
  0x3f   :  { %674 = vrot.lane.b32.xlu2 %v3125_v0, %s3063_s27 }
  0x40   :  { %2702 = vmatmul.msk.f32.gmra.mxu0 %vm101_vm0, %v3179_v10 }
  0x42   :  { %2710 = vmatmul.msk.f32.gmra.mxu1 %vm101_vm0, %v3225_v17 }
  0x44   :  { %676 = vrot.lane.b32.xlu1 %v3155_v5, %s3063_s27  ;;  %964 = vrot.lane.b32.xlu0 %v3125_v0, %s3064_s28 }
  0x47   :  { %966 = vrot.lane.b32.xlu2 %v3155_v5, %s3064_s28 }
  0x48   :  { %2703 = vmatmul.msk.f32.gmra.mxu0 %vm101_vm0, %v3177_v9 }
  0x4a   :  { %2711 = vmatmul.msk.f32.gmra.mxu1 %vm101_vm0, %v3239_v19 }
  0x4c   :  { %678 = vrot.lane.b32.xlu0 %v3145_v4, %s3063_s27  ;;  %968 = vrot.lane.b32.xlu1 %v3145_v4, %s3064_s28 }
  0x4f   :  { %680 = vrot.lane.b32.xlu2 %v3167_v7, %s3063_s27 }
  0x54   :  { %682 = vrot.lane.b32.xlu1 %v3179_v10, %s3063_s27  ;;  %970 = vrot.lane.b32.xlu0 %v3167_v7, %s3064_s28 }
  0x57   :  { %972 = vrot.lane.b32.xlu2 %v3179_v10, %s3064_s28 }
  0x5c   :  { %684 = vrot.lane.b32.xlu0 %v3177_v9, %s3063_s27  ;;  %974 = vrot.lane.b32.xlu1 %v3177_v9, %s3064_s28 }
  0x5f   :  { %686 = vrot.lane.b32.xlu2 %v3175_v8, %s3063_s27 }
  0x64   :  { %688 = vrot.lane.b32.xlu1 %v3191_v11, %s3063_s27  ;;  %976 = vrot.lane.b32.xlu0 %v3175_v8, %s3064_s28 }
  0x67   :  { %978 = vrot.lane.b32.xlu2 %v3191_v11, %s3064_s28 }
  0x69   :  { %v3317_v22 = vpop.permute.xlu2 %388 }
  0x6c   :  { %690 = vrot.lane.b32.xlu0 %v3193_v12, %s3063_s27  ;;  %980 = vrot.lane.b32.xlu1 %v3193_v12, %s3064_s28 }
  0x6f   :  { %692 = vrot.lane.b32.xlu2 %v3201_v13, %s3063_s27 }
  0x71   :  { %v3325_v23 = vpop.permute.xlu2 %390 }
  0x74   :  { %694 = vrot.lane.b32.xlu1 %v3214_v16, %s3063_s27  ;;  %982 = vrot.lane.b32.xlu0 %v3201_v13, %s3064_s28 }
  0x77   :  { %984 = vrot.lane.b32.xlu2 %v3214_v16, %s3064_s28 }
  0x79   :  { %v397_v24 = vpop.permute.xlu2 %396 }
  0x7a   :  { %2736 = vmatmul.msk.f32.vlgmr.msra.gmra.mxu3 %vm101_vm0, %v397_v24 }
  0x7b   :  { %1165 = vmatpush.msra.mxu3 %v3210_v14 }
  0x7c   :  { %696 = vrot.lane.b32.xlu0 %v3212_v15, %s3063_s27  ;;  %986 = vrot.lane.b32.xlu1 %v3212_v15, %s3064_s28 }
  0x7d   :  { %1166 = vmatpush.msra.mxu3 %v3230_v18 }
  0x7e   :  { %v385_v25 = vpop.permute.xlu1 %384  ;;  %v381_v26 = vpop.permute.xlu0 %380 }
  0x7f   :  { %2728 = vmatmul.msk.f32.vlgmr.msra.gmra.mxu2 %vm101_vm0, %v381_v26  ;;  %698 = vrot.lane.b32.xlu2 %v3225_v17, %s3063_s27 }
  0x80   :  { %1167 = vmatpush.msra.mxu3 %v3260_v20  ;;  %1455 = vmatpush.msra.mxu2 %v3210_v14 }
  0x81   :  { %v403_v36 = vpop.permute.xlu2 %402 }
  0x82   :  { %1168 = vmatpush.msra.mxu3 %v3302_v21  ;;  %1456 = vmatpush.msra.mxu2 %v3230_v18 }
  0x84   :  { %700 = vrot.lane.b32.xlu1 %v3239_v19, %s3063_s27  ;;  %988 = vrot.lane.b32.xlu0 %v3225_v17, %s3064_s28 }
  0x85   :  { %1457 = vmatpush.msra.mxu2 %v3260_v20 }
  0x86   :  { %v387_v27 = vpop.permute.xlu1 %386  ;;  %v383_v28 = vpop.permute.xlu0 %382 }
  0x87   :  { %2729 = vmatmul.msk.f32.gmra.mxu2 %vm101_vm0, %v383_v28  ;;  %990 = vrot.lane.b32.xlu2 %v3239_v19, %s3064_s28 }
  0x88   :  { %1458 = vmatpush.msra.mxu2 %v3302_v21 }
  0x89   :  { %v409_v46 = vpop.permute.xlu2 %408 }
  0x8c   :  { %1250 = vrot.lane.b32.xlu0 %v3127_v1, %s3065_s13  ;;  %1540 = vrot.lane.b32.xlu1 %v3127_v1, %s3066_s14 }
  0x8d   :  { %v167_v30 = vpop.f32.mrf.mxu0 }
  0x8e   :  { %v168_v31 = vadd.f32 %v3359_v29, %v167_v30  ;;  %v3366_v32 = vpop.permute.xlu1 %394  ;;  %v393_v33 = vpop.permute.xlu0 %392 }
  0x8f   :  { %2730 = vmatmul.msk.f32.gmra.mxu2 %vm101_vm0, %v385_v25  ;;  %1252 = vrot.lane.b32.xlu2 %v3157_v6, %s3065_s13  ;;  %v191_v62 = vpop.f32.mrf.mxu1 }
  0x90   :  { %v215_v34 = vmax.f32 %v168_v31, 0.0 }
  0x91   :  { %v3408_v52 = vpop.permute.xlu2 %960 }
  0x92   :  { %2712 = vmatmul.msk.f32.vlgmr.msrb.gmra.mxu1 %vm234_vm1, %v215_v34 }
  0x93   :  { %1618 = vmatpush.msrb.mxu1 %v3136_v2 }
  0x94   :  { %1254 = vrot.lane.b32.xlu1 %v3125_v0, %s3065_s13  ;;  %1542 = vrot.lane.b32.xlu0 %v3157_v6, %s3066_s14 }
  0x95   :  { %v170_v35 = vpop.f32.mrf.mxu0  ;;  %1619 = vmatpush.msrb.mxu1 %v3141_v3 }
  0x96   :  { %v171_v37 = vadd.f32 %v3359_v29, %v170_v35  ;;  %v401_v38 = vpop.permute.xlu1 %400  ;;  %v399_v39 = vpop.permute.xlu0 %398 }
  0x97   :  { %2731 = vmatmul.msk.f32.gmra.mxu2 %vm101_vm0, %v387_v27  ;;  %2737 = vmatmul.msk.f32.gmra.mxu3 %vm101_vm0, %v399_v39  ;;  %v194_v27 = vpop.f32.mrf.mxu1 }
  0x98   :  { %v216_v40 = vmax.f32 %v171_v37, 0.0  ;;  %1544 = vrot.lane.b32.xlu2 %v3125_v0, %s3066_s14 }
  0x99   :  { %v675_v58 = vpop.permute.xlu2 %674 }
  0x9a   :  { %2713 = vmatmul.msk.f32.gmra.mxu1 %vm234_vm1, %v216_v40 }
  0x9c   :  { %1256 = vrot.lane.b32.xlu0 %v3155_v5, %s3065_s13  ;;  %1546 = vrot.lane.b32.xlu1 %v3155_v5, %s3066_s14 }
  0x9d   :  { %v173_v41 = vpop.f32.mrf.mxu0 }
  0x9e   :  { %v174_v42 = vadd.f32 %v3359_v29, %v173_v41  ;;  %v407_v43 = vpop.permute.xlu1 %406  ;;  %v405_v44 = vpop.permute.xlu0 %404 }
  0x9f   :  { %2732 = vmatmul.msk.f32.gmra.mxu2 %vm101_vm0, %v3317_v22  ;;  %2738 = vmatmul.msk.f32.gmra.mxu3 %vm101_vm0, %v401_v38  ;;  %v195_v38 = vadd.f32 %v3359_v29, %v194_v27 }
  0xa0   :  { %v217_v45 = vmax.f32 %v174_v42, 0.0  ;;  %1258 = vrot.lane.b32.xlu2 %v3145_v4, %s3065_s13 }
  0xa1   :  { %v3448_v26 = vpop.permute.xlu2 %966  ;;  %v224_v41 = vmax.f32 %v195_v38, 0.0 }
  0xa2   :  { %2714 = vmatmul.msk.f32.gmra.mxu1 %vm234_vm1, %v217_v45 }
  0xa4   :  { %1260 = vrot.lane.b32.xlu1 %v3167_v7, %s3065_s13  ;;  %1548 = vrot.lane.b32.xlu0 %v3145_v4, %s3066_s14 }
  0xa5   :  { %v176_v47 = vpop.f32.mrf.mxu0 }
  0xa6   :  { %v177_v48 = vadd.f32 %v3359_v29, %v176_v47  ;;  %v671_v49 = vpop.permute.xlu1 %670  ;;  %v411_v50 = vpop.permute.xlu0 %410 }
  0xa7   :  { %2733 = vmatmul.msk.f32.gmra.mxu2 %vm101_vm0, %v3325_v23  ;;  %2760 = vmatmul.msk.f32.vlgmr.msrb.gmra.mxu0 %vm101_vm0, %v671_v49 }
  0xa8   :  { %v218_v51 = vmax.f32 %v177_v48, 0.0  ;;  %2739 = vmatmul.msk.f32.gmra.mxu3 %vm101_vm0, %v403_v36  ;;  %1550 = vrot.lane.b32.xlu2 %v3167_v7, %s3066_s14  ;;  %v197_v36 = vpop.f32.mrf.mxu1 }
  0xa9   :  { %1908 = vmatpush.msrb.mxu0 %v3136_v2  ;;  %v681_v35 = vpop.permute.xlu2 %680 }
  0xaa   :  { %2715 = vmatmul.msk.f32.gmra.mxu1 %vm234_vm1, %v218_v51 }
  0xab   :  { %1909 = vmatpush.msrb.mxu0 %v3141_v3 }
  0xac   :  { %1262 = vrot.lane.b32.xlu0 %v3179_v10, %s3065_s13  ;;  %1552 = vrot.lane.b32.xlu1 %v3179_v10, %s3066_s14 }
  0xad   :  { %v179_v53 = vpop.f32.mrf.mxu0 }
  0xae   :  { %v180_v54 = vadd.f32 %v3359_v29, %v179_v53  ;;  %v673_v55 = vpop.permute.xlu0 %672  ;;  %v3422_v57 = vpop.permute.xlu1 %962 }
  0xaf   :  { %2734 = vmatmul.msk.f32.gmra.mxu2 %vm101_vm0, %v393_v33  ;;  %2761 = vmatmul.msk.f32.gmra.mxu0 %vm101_vm0, %v673_v55  ;;  %v192_v33 = vadd.f32 %v3359_v29, %v191_v62 }
  0xb0   :  { %v219_v56 = vmax.f32 %v180_v54, 0.0  ;;  %2740 = vmatmul.msk.f32.gmra.mxu3 %vm101_vm0, %v405_v44  ;;  %1264 = vrot.lane.b32.xlu2 %v3177_v9, %s3065_s13  ;;  %v200_v42 = vpop.f32.mrf.mxu1 }
  0xb1   :  { %v223_v37 = vmax.f32 %v192_v33, 0.0  ;;  %v3483_v44 = vpop.permute.xlu2 %972  ;;  %v201_v48 = vadd.f32 %v3359_v29, %v200_v42 }
  0xb2   :  { %2716 = vmatmul.msk.f32.gmra.mxu1 %vm234_vm1, %v219_v56 }
  0xb3   :  { %v226_v51 = vmax.f32 %v201_v48, 0.0 }
  0xb4   :  { %1266 = vrot.lane.b32.xlu1 %v3175_v8, %s3065_s13  ;;  %1554 = vrot.lane.b32.xlu0 %v3177_v9, %s3066_s14 }
  0xb5   :  { %v182_v59 = vpop.f32.mrf.mxu0 }
  0xb6   :  { %v183_v60 = vadd.f32 %v3359_v29, %v182_v59  ;;  %v3436_v63 = vpop.permute.xlu0 %964  ;;  %v677_v22 = vpop.permute.xlu1 %676 }
  0xb7   :  { %2735 = vmatmul.msk.f32.gmra.mxu2 %vm101_vm0, %v3366_v32  ;;  %2762 = vmatmul.msk.f32.gmra.mxu0 %vm101_vm0, %v675_v58 }
  0xb8   :  { %v220_v61 = vmax.f32 %v183_v60, 0.0  ;;  %2741 = vmatmul.msk.f32.gmra.mxu3 %vm101_vm0, %v407_v43  ;;  %1556 = vrot.lane.b32.xlu2 %v3175_v8, %s3066_s14  ;;  %v198_v43 = vadd.f32 %v3359_v29, %v197_v36  ;;  %v203_v47 = vpop.f32.mrf.mxu1 }
  0xb9   :  { %v204_v53 = vadd.f32 %v3359_v29, %v203_v47 }
  0xba   :  { %2717 = vmatmul.msk.f32.gmra.mxu1 %vm234_vm1, %v220_v61 }
  0xbc   :  { %1268 = vrot.lane.b32.xlu0 %v3191_v11, %s3065_s13  ;;  %1558 = vrot.lane.b32.xlu1 %v3191_v11, %s3066_s14 }
  0xbd   :  { %v185_v23 = vpop.f32.mrf.mxu0 }
  0xbe   :  { %v186_v24 = vadd.f32 %v3359_v29, %v185_v23  ;;  %v679_v28 = vpop.permute.xlu0 %678  ;;  %v3461_v34 = vpop.permute.xlu1 %968 }
  0xbf   :  { %2763 = vmatmul.msk.f32.gmra.mxu0 %vm101_vm0, %v677_v22 }
  0xc0   :  { %v221_v25 = vmax.f32 %v186_v24, 0.0  ;;  %2742 = vmatmul.msk.f32.gmra.mxu3 %vm101_vm0, %v409_v46  ;;  %1270 = vrot.lane.b32.xlu2 %v3193_v12, %s3065_s13  ;;  %v225_v46 = vmax.f32 %v198_v43, 0.0  ;;  %v206_v55 = vpop.f32.mrf.mxu1 }
  0xc2   :  { %2718 = vmatmul.msk.f32.gmra.mxu1 %vm234_vm1, %v221_v25 }
  0xc4   :  { %1272 = vrot.lane.b32.xlu1 %v3201_v13, %s3065_s13  ;;  %1560 = vrot.lane.b32.xlu0 %v3193_v12, %s3066_s14 }
  0xc5   :  { %v188_v30 = vpop.f32.mrf.mxu0 }
  0xc6   :  { %v189_v31 = vadd.f32 %v3359_v29, %v188_v30  ;;  %v3472_v39 = vpop.permute.xlu0 %970  ;;  %v683_v40 = vpop.permute.xlu1 %682 }
  0xc7   :  { %2764 = vmatmul.msk.f32.gmra.mxu0 %vm101_vm0, %v679_v28 }
  0xc8   :  { %v222_v32 = vmax.f32 %v189_v31, 0.0  ;;  %2743 = vmatmul.msk.f32.gmra.mxu3 %vm101_vm0, %v411_v50  ;;  %1562 = vrot.lane.b32.xlu2 %v3201_v13, %s3066_s14  ;;  %v687_v50 = vpop.permute.xlu2 %686 }
  0xca   :  { %2719 = vmatmul.msk.f32.gmra.mxu1 %vm234_vm1, %v222_v32 }
  0xcc   :  { %1274 = vrot.lane.b32.xlu0 %v3214_v16, %s3065_s13  ;;  %1564 = vrot.lane.b32.xlu1 %v3214_v16, %s3066_s14 }
  0xce   :  { %v685_v45 = vpop.permute.xlu0 %684  ;;  %v3494_v49 = vpop.permute.xlu1 %974 }
  0xcf   :  { %2765 = vmatmul.msk.f32.gmra.mxu0 %vm101_vm0, %v681_v35 }
  0xd0   :  { %1276 = vrot.lane.b32.xlu2 %v3212_v15, %s3065_s13  ;;  %v3516_v58 = vpop.permute.xlu2 %978 }
  0xd2   :  { %2720 = vmatmul.msk.f32.gmra.mxu1 %vm234_vm1, %v223_v37 }
  0xd4   :  { %1278 = vrot.lane.b32.xlu1 %v3225_v17, %s3065_s13  ;;  %1566 = vrot.lane.b32.xlu0 %v3212_v15, %s3066_s14 }
  0xd6   :  { %v3505_v54 = vpop.permute.xlu0 %976  ;;  %v689_v56 = vpop.permute.xlu1 %688 }
  0xd7   :  { %2766 = vmatmul.msk.f32.gmra.mxu0 %vm101_vm0, %v683_v40 }
  0xd8   :  { %1568 = vrot.lane.b32.xlu2 %v3225_v17, %s3066_s14  ;;  %v693_v22 = vpop.permute.xlu2 %692 }
  0xda   :  { %2721 = vmatmul.msk.f32.gmra.mxu1 %vm234_vm1, %v224_v41 }
  0xdc   :  { %1280 = vrot.lane.b32.xlu0 %v3239_v19, %s3065_s13  ;;  %1570 = vrot.lane.b32.xlu1 %v3239_v19, %s3066_s14 }
  0xde   :  { %v691_v59 = vpop.permute.xlu0 %690  ;;  %v3527_v62 = vpop.permute.xlu1 %980 }
  0xdf   :  { %2767 = vmatmul.msk.f32.gmra.mxu0 %vm101_vm0, %v685_v45 }
  0xe0   :  { %1830 = vrot.lane.b32.xlu2 %v3127_v1, %s3067_s15  ;;  %v3551_v32 = vpop.permute.xlu2 %984 }
  0xe2   :  { %2722 = vmatmul.msk.f32.gmra.mxu1 %vm234_vm1, %v225_v46 }
  0xe4   :  { %1832 = vrot.lane.b32.xlu1 %v3157_v6, %s3067_s15  ;;  %2120 = vrot.lane.b32.xlu0 %v3127_v1, %s3068_s16  ;;  %v227_v1 = vmax.f32 %v204_v53, 0.0 }
  0xe6   :  { %v3538_v25 = vpop.permute.xlu0 %982  ;;  %v695_v28 = vpop.permute.xlu1 %694 }
  0xe7   :  { %2768 = vmatmul.msk.f32.gmra.mxu0 %vm101_vm0, %v687_v50 }
  0xe8   :  { %2122 = vrot.lane.b32.xlu2 %v3157_v6, %s3068_s16  ;;  %v207_v6 = vadd.f32 %v3359_v29, %v206_v55  ;;  %v699_v38 = vpop.permute.xlu2 %698 }
  0xea   :  { %2723 = vmatmul.msk.f32.gmra.mxu1 %vm234_vm1, %v226_v51  ;;  %v228_v60 = vmax.f32 %v207_v6, 0.0 }
  0xec   :  { %1834 = vrot.lane.b32.xlu0 %v3125_v0, %s3067_s15  ;;  %2124 = vrot.lane.b32.xlu1 %v3125_v0, %s3068_s16  ;;  %v209_v0 = vpop.f32.mrf.mxu1 }
  0xed   :  { %v210_v61 = vadd.f32 %v3359_v29, %v209_v0 }
  0xee   :  { %v697_v33 = vpop.permute.xlu0 %696  ;;  %v3569_v37 = vpop.permute.xlu1 %986 }
  0xef   :  { %2769 = vmatmul.msk.f32.gmra.mxu0 %vm101_vm0, %v689_v56 }
  0xf0   :  { %1836 = vrot.lane.b32.xlu2 %v3155_v5, %s3067_s15 }
  0xf2   :  { %2724 = vmatmul.msk.f32.gmra.mxu1 %vm234_vm1, %v227_v1 }
  0xf4   :  { %1838 = vrot.lane.b32.xlu1 %v3145_v4, %s3067_s15  ;;  %2126 = vrot.lane.b32.xlu0 %v3155_v5, %s3068_s16  ;;  %v229_v5 = vmax.f32 %v210_v61, 0.0  ;;  %v212_v23 = vpop.f32.mrf.mxu1 }
  0xf5   :  { %v213_v24 = vadd.f32 %v3359_v29, %v212_v23 }
  0xf6   :  { %v701_v42 = vpop.permute.xlu1 %700 }
  0xf7   :  { %2770 = vmatmul.msk.f32.gmra.mxu0 %vm101_vm0, %v691_v59  ;;  %v230_v30 = vmax.f32 %v213_v24, 0.0 }
  0xf8   :  { %2128 = vrot.lane.b32.xlu2 %v3145_v4, %s3068_s16 }
  0xfa   :  { %2725 = vmatmul.msk.f32.gmra.mxu1 %vm234_vm1, %v228_v60 }
  0xfc   :  { %1840 = vrot.lane.b32.xlu0 %v3167_v7, %s3067_s15  ;;  %2130 = vrot.lane.b32.xlu1 %v3167_v7, %s3068_s16 }
  0xff   :  { %2771 = vmatmul.msk.f32.gmra.mxu0 %vm101_vm0, %v693_v22 }
 0x100   :  { %1842 = vrot.lane.b32.xlu2 %v3179_v10, %s3067_s15 }
 0x102   :  { %2726 = vmatmul.msk.f32.gmra.mxu1 %vm234_vm1, %v229_v5  ;;  %v461_v4 = vpop.f32.mrf.mxu2 }
 0x103   :  { %v462_v27 = vadd.f32 %v3359_v29, %v461_v4 }
 0x104   :  { %1844 = vrot.lane.b32.xlu1 %v3177_v9, %s3067_s15  ;;  %2132 = vrot.lane.b32.xlu0 %v3179_v10, %s3068_s16 }
 0x105   :  { %v509_v7 = vmax.f32 %v462_v27, 0.0 }
 0x107   :  { %2744 = vmatmul.msk.f32.vlgmr.msrb.gmra.mxu3 %vm234_vm1, %v509_v7  ;;  %2772 = vmatmul.msk.f32.gmra.mxu0 %vm101_vm0, %v695_v28 }
 0x108   :  { %2134 = vrot.lane.b32.xlu2 %v3177_v9, %s3068_s16  ;;  %1745 = vmatpush.msrb.mxu3 %v3210_v14 }
 0x10a   :  { %2727 = vmatmul.msk.f32.gmra.mxu1 %vm234_vm1, %v230_v30  ;;  %v464_v31 = vpop.f32.mrf.mxu2  ;;  %1746 = vmatpush.msrb.mxu3 %v3230_v18 }
 0x10b   :  { %v465_v10 = vadd.f32 %v3359_v29, %v464_v31 }
 0x10c   :  { %1846 = vrot.lane.b32.xlu0 %v3175_v8, %s3067_s15  ;;  %2136 = vrot.lane.b32.xlu1 %v3175_v8, %s3068_s16 }
 0x10d   :  { %v510_v35 = vmax.f32 %v465_v10, 0.0  ;;  %1747 = vmatpush.msrb.mxu3 %v3260_v20 }
 0x10f   :  { %v3560_v9 = vpop.f32.mrf.mxu1  ;;  %2745 = vmatmul.msk.f32.gmra.mxu3 %vm234_vm1, %v510_v35  ;;  %2773 = vmatmul.msk.f32.gmra.mxu0 %vm101_vm0, %v697_v33 }
 0x110   :  { %1848 = vrot.lane.b32.xlu2 %v3191_v11, %s3067_s15  ;;  %1748 = vmatpush.msrb.mxu3 %v3302_v21 }
 0x112   :  { %2792 = vmatmul.msk.f32.vlgmr.msra.gmra.mxu1 %vm101_vm0, %v3408_v52  ;;  %v467_v36 = vpop.f32.mrf.mxu2  ;;  %v3586_v52 = vpop.permute.xlu0 %988 }
 0x113   :  { %v468_v8 = vadd.f32 %v3359_v29, %v467_v36  ;;  %2198 = vmatpush.msra.mxu1 %v3136_v2 }
 0x114   :  { %1850 = vrot.lane.b32.xlu1 %v3193_v12, %s3067_s15  ;;  %2138 = vrot.lane.b32.xlu0 %v3191_v11, %s3068_s16 }
 0x115   :  { %v511_v40 = vmax.f32 %v468_v8, 0.0  ;;  %2199 = vmatpush.msra.mxu1 %v3141_v3 }
 0x117   :  { %v3578_v41 = vpop.f32.mrf.mxu1  ;;  %2746 = vmatmul.msk.f32.gmra.mxu3 %vm234_vm1, %v511_v40  ;;  %2774 = vmatmul.msk.f32.gmra.mxu0 %vm101_vm0, %v699_v38 }
 0x118   :  { %2140 = vrot.lane.b32.xlu2 %v3193_v12, %s3068_s16 }
 0x11a   :  { %2793 = vmatmul.msk.f32.gmra.mxu1 %vm101_vm0, %v3422_v57  ;;  %v470_v2 = vpop.f32.mrf.mxu2  ;;  %v3601_v57 = vpop.permute.xlu2 %990 }
 0x11b   :  { %v471_v11 = vadd.f32 %v3359_v29, %v470_v2 }
 0x11c   :  { %1852 = vrot.lane.b32.xlu0 %v3201_v13, %s3067_s15  ;;  %2142 = vrot.lane.b32.xlu1 %v3201_v13, %s3068_s16  ;;  %v1251_v13 = vpop.permute.xlu0 %1250 }
 0x11d   :  { %v512_v3 = vmax.f32 %v471_v11, 0.0 }
 0x11f   :  { %v3593_v43 = vpop.f32.mrf.mxu1  ;;  %2747 = vmatmul.msk.f32.gmra.mxu3 %vm234_vm1, %v512_v3  ;;  %2775 = vmatmul.msk.f32.gmra.mxu0 %vm101_vm0, %v701_v42 }
 0x120   :  { %1854 = vrot.lane.b32.xlu2 %v3214_v16, %s3067_s15 }
 0x122   :  { %2794 = vmatmul.msk.f32.gmra.mxu1 %vm101_vm0, %v3436_v63  ;;  %v473_v12 = vpop.f32.mrf.mxu2  ;;  %v1253_v56 = vpop.permute.xlu2 %1252 }
 0x123   :  { %v474_v45 = vadd.f32 %v3359_v29, %v473_v12 }
 0x124   :  { %v751_v46 = vpop.f32.mrf.mxu0  ;;  %1856 = vrot.lane.b32.xlu1 %v3212_v15, %s3067_s15  ;;  %2144 = vrot.lane.b32.xlu0 %v3214_v16, %s3068_s16  ;;  %v3618_v16 = vpop.permute.xlu1 %1540 }
 0x125   :  { %v513_v47 = vmax.f32 %v474_v45, 0.0  ;;  %v752_v48 = vadd.f32 %v3359_v29, %v751_v46  ;;  %v3638_v0 = vpop.permute.xlu0 %1542 }
 0x127   :  { %v799_v50 = vmax.f32 %v752_v48, 0.0  ;;  %v3609_v51 = vpop.f32.mrf.mxu1  ;;  %2748 = vmatmul.msk.f32.gmra.mxu3 %vm234_vm1, %v513_v47  ;;  %2824 = vmatmul.msk.f32.vlgmr.msra.gmra.mxu0 %vm101_vm0, %v1251_v13 }
 0x128   :  { %2146 = vrot.lane.b32.xlu2 %v3212_v15, %s3068_s16 }
 0x129   :  { %2776 = vmatmul.msk.f32.vlgmr.msrb.gmra.mxu2 %vm234_vm1, %v799_v50 }
 0x12a   :  { %2795 = vmatmul.msk.f32.gmra.mxu1 %vm101_vm0, %v3448_v26  ;;  %v476_v63 = vpop.f32.mrf.mxu2  ;;  %2035 = vmatpush.msrb.mxu2 %v3210_v14  ;;  %v485_v26 = vpop.f32.mrf.mxu3 }
 0x12b   :  { %v477_v53 = vadd.f32 %v3359_v29, %v476_v63  ;;  %v3652_v28 = vpop.permute.xlu2 %1544  ;;  %v486_v36 = vadd.f32 %v3359_v29, %v485_v26 }
 0x12c   :  { %v754_v55 = vpop.f32.mrf.mxu0  ;;  %1858 = vrot.lane.b32.xlu0 %v3225_v17, %s3067_s15  ;;  %2148 = vrot.lane.b32.xlu1 %v3225_v17, %s3068_s16  ;;  %v1255_v22 = vpop.permute.xlu1 %1254 }
 0x12d   :  { %v514_v15 = vmax.f32 %v477_v53, 0.0  ;;  %v755_v1 = vadd.f32 %v3359_v29, %v754_v55  ;;  %2036 = vmatpush.msrb.mxu2 %v3230_v18  ;;  %v1257_v30 = vpop.permute.xlu0 %1256  ;;  %v517_v38 = vmax.f32 %v486_v36, 0.0 }
 0x12f   :  { %v800_v6 = vmax.f32 %v755_v1, 0.0  ;;  %v3628_v59 = vpop.f32.mrf.mxu1  ;;  %2749 = vmatmul.msk.f32.gmra.mxu3 %vm234_vm1, %v514_v15  ;;  %2825 = vmatmul.msk.f32.gmra.mxu0 %vm101_vm0, %v1253_v56 }
 0x130   :  { %1860 = vrot.lane.b32.xlu2 %v3239_v19, %s3067_s15  ;;  %2037 = vmatpush.msrb.mxu2 %v3260_v20 }
 0x131   :  { %2777 = vmatmul.msk.f32.gmra.mxu2 %vm234_vm1, %v800_v6 }
 0x132   :  { %2796 = vmatmul.msk.f32.gmra.mxu1 %vm101_vm0, %v3461_v34  ;;  %v479_v17 = vpop.f32.mrf.mxu2  ;;  %2038 = vmatpush.msrb.mxu2 %v3302_v21  ;;  %v488_v34 = vpop.f32.mrf.mxu3 }
 0x133   :  { %v480_v60 = vadd.f32 %v3359_v29, %v479_v17  ;;  %v1259_v2 = vpop.permute.xlu2 %1258  ;;  %v489_v12 = vadd.f32 %v3359_v29, %v488_v34 }
 0x134   :  { %v757_v61 = vpop.f32.mrf.mxu0  ;;  %2150 = vrot.lane.b32.xlu0 %v3239_v19, %s3068_s16 }
 0x135   :  { %v515_v5 = vmax.f32 %v480_v60, 0.0  ;;  %v758_v23 = vadd.f32 %v3359_v29, %v757_v61  ;;  %v518_v45 = vmax.f32 %v489_v12, 0.0 }
 0x137   :  { %v801_v4 = vmax.f32 %v758_v23, 0.0  ;;  %v3645_v24 = vpop.f32.mrf.mxu1  ;;  %2750 = vmatmul.msk.f32.gmra.mxu3 %vm234_vm1, %v515_v5  ;;  %2826 = vmatmul.msk.f32.gmra.mxu0 %vm101_vm0, %v1255_v22 }
 0x139   :  { %2778 = vmatmul.msk.f32.gmra.mxu2 %vm234_vm1, %v801_v4 }
 0x13a   :  { %2797 = vmatmul.msk.f32.gmra.mxu1 %vm101_vm0, %v3472_v39  ;;  %v482_v27 = vpop.f32.mrf.mxu2  ;;  %v3662_v39 = vpop.permute.xlu1 %1546 }
 0x13b   :  { %v483_v19 = vadd.f32 %v3359_v29, %v482_v27  ;;  %v491_v8 = vpop.f32.mrf.mxu3 }
 0x13c   :  { %v760_v7 = vpop.f32.mrf.mxu0  ;;  %v492_v53 = vadd.f32 %v3359_v29, %v491_v8 }
 0x13d   :  { %v516_v31 = vmax.f32 %v483_v19, 0.0  ;;  %v761_v10 = vadd.f32 %v3359_v29, %v760_v7 }
 0x13e   :  { %v519_v55 = vmax.f32 %v492_v53, 0.0 }
 0x13f   :  { %v802_v33 = vmax.f32 %v761_v10, 0.0  ;;  %v3656_v35 = vpop.f32.mrf.mxu1  ;;  %2751 = vmatmul.msk.f32.gmra.mxu3 %vm234_vm1, %v516_v31  ;;  %2827 = vmatmul.msk.f32.gmra.mxu0 %vm101_vm0, %v1257_v30 }
 0x141   :  { %2779 = vmatmul.msk.f32.gmra.mxu2 %vm234_vm1, %v802_v33 }
 0x142   :  { %2798 = vmatmul.msk.f32.gmra.mxu1 %vm101_vm0, %v3483_v44  ;;  %v3675_v44 = vpop.permute.xlu0 %1548  ;;  %v1261_v46 = vpop.permute.xlu1 %1260 }
 0x143   :  { %v494_v47 = vpop.f32.mrf.mxu3 }
 0x144   :  { %v763_v40 = vpop.f32.mrf.mxu0  ;;  %v495_v60 = vadd.f32 %v3359_v29, %v494_v47 }
 0x145   :  { %v764_v11 = vadd.f32 %v3359_v29, %v763_v40 }
 0x146   :  { %v520_v61 = vmax.f32 %v495_v60, 0.0 }
 0x147   :  { %v803_v42 = vmax.f32 %v764_v11, 0.0  ;;  %v3667_v3 = vpop.f32.mrf.mxu1  ;;  %2752 = vmatmul.msk.f32.gmra.mxu3 %vm234_vm1, %v517_v38  ;;  %2828 = vmatmul.msk.f32.gmra.mxu0 %vm101_vm0, %v1259_v2 }
 0x149   :  { %2780 = vmatmul.msk.f32.gmra.mxu2 %vm234_vm1, %v803_v42 }
 0x14a   :  { %2799 = vmatmul.msk.f32.gmra.mxu1 %vm101_vm0, %v3494_v49  ;;  %v3686_v49 = vpop.permute.xlu2 %1550  ;;  %v1263_v15 = vpop.permute.xlu0 %1262 }
 0x14b   :  { %v497_v26 = vpop.f32.mrf.mxu3 }
 0x14c   :  { %v766_v13 = vpop.f32.mrf.mxu0  ;;  %v498_v27 = vadd.f32 %v3359_v29, %v497_v26 }
 0x14d   :  { %v767_v48 = vadd.f32 %v3359_v29, %v766_v13 }
 0x14e   :  { %v521_v7 = vmax.f32 %v498_v27, 0.0 }
 0x14f   :  { %v804_v50 = vmax.f32 %v767_v48, 0.0  ;;  %v3678_v63 = vpop.f32.mrf.mxu1  ;;  %2753 = vmatmul.msk.f32.gmra.mxu3 %vm234_vm1, %v518_v45  ;;  %2829 = vmatmul.msk.f32.gmra.mxu0 %vm101_vm0, %v1261_v46 }
 0x151   :  { %2781 = vmatmul.msk.f32.gmra.mxu2 %vm234_vm1, %v804_v50 }
 0x152   :  { %2800 = vmatmul.msk.f32.gmra.mxu1 %vm101_vm0, %v3505_v54  ;;  %v3697_v54 = vpop.permute.xlu1 %1552  ;;  %v1265_v5 = vpop.permute.xlu2 %1264 }
 0x153   :  { %v500_v19 = vpop.f32.mrf.mxu3 }
 0x154   :  { %v769_v56 = vpop.f32.mrf.mxu0  ;;  %v501_v8 = vadd.f32 %v3359_v29, %v500_v19 }
 0x155   :  { %v770_v1 = vadd.f32 %v3359_v29, %v769_v56 }
 0x156   :  { %v522_v40 = vmax.f32 %v501_v8, 0.0 }
 0x157   :  { %v805_v6 = vmax.f32 %v770_v1, 0.0  ;;  %v3689_v17 = vpop.f32.mrf.mxu1  ;;  %2754 = vmatmul.msk.f32.gmra.mxu3 %vm234_vm1, %v519_v55  ;;  %2830 = vmatmul.msk.f32.gmra.mxu0 %vm101_vm0, %v1263_v15 }
 0x159   :  { %2782 = vmatmul.msk.f32.gmra.mxu2 %vm234_vm1, %v805_v6 }
 0x15a   :  { %2801 = vmatmul.msk.f32.gmra.mxu1 %vm101_vm0, %v3516_v58  ;;  %v3708_v58 = vpop.permute.xlu0 %1554  ;;  %v1267_v31 = vpop.permute.xlu1 %1266 }
 0x15b   :  { %v3717_v38 = vpop.permute.xlu2 %1556 }
 0x15c   :  { %v772_v22 = vpop.f32.mrf.mxu0 }
 0x15d   :  { %v773_v23 = vadd.f32 %v3359_v29, %v772_v22 }
 0x15f   :  { %v806_v4 = vmax.f32 %v773_v23, 0.0  ;;  %v3700_v34 = vpop.f32.mrf.mxu1  ;;  %2755 = vmatmul.msk.f32.gmra.mxu3 %vm234_vm1, %v520_v61  ;;  %2831 = vmatmul.msk.f32.gmra.mxu0 %vm101_vm0, %v1265_v5 }
 0x161   :  { %2783 = vmatmul.msk.f32.gmra.mxu2 %vm234_vm1, %v806_v4 }
 0x162   :  { %2802 = vmatmul.msk.f32.gmra.mxu1 %vm101_vm0, %v3527_v62  ;;  %v503_v62 = vpop.f32.mrf.mxu3  ;;  %v1269_v11 = vpop.permute.xlu0 %1268 }
 0x163   :  { %v504_v46 = vadd.f32 %v3359_v29, %v503_v62  ;;  %v1271_v47 = vpop.permute.xlu2 %1270 }
 0x164   :  { %v775_v30 = vpop.f32.mrf.mxu0 }
 0x165   :  { %v776_v10 = vadd.f32 %v3359_v29, %v775_v30  ;;  %v523_v13 = vmax.f32 %v504_v46, 0.0 }
 0x167   :  { %v807_v33 = vmax.f32 %v776_v10, 0.0  ;;  %v3711_v36 = vpop.f32.mrf.mxu1  ;;  %2756 = vmatmul.msk.f32.gmra.mxu3 %vm234_vm1, %v521_v7  ;;  %2832 = vmatmul.msk.f32.gmra.mxu0 %vm101_vm0, %v1267_v31 }
 0x169   :  { %2784 = vmatmul.msk.f32.gmra.mxu2 %vm234_vm1, %v807_v33 }
 0x16a   :  { %2803 = vmatmul.msk.f32.gmra.mxu1 %vm101_vm0, %v3538_v25  ;;  %v3730_v25 = vpop.permute.xlu1 %1558  ;;  %v506_v50 = vpop.f32.mrf.mxu3 }
 0x16b   :  { %v507_v15 = vadd.f32 %v3359_v29, %v506_v50 }
 0x16c   :  { %v778_v2 = vpop.f32.mrf.mxu0 }
 0x16d   :  { %v779_v42 = vadd.f32 %v3359_v29, %v778_v2  ;;  %v524_v1 = vmax.f32 %v507_v15, 0.0 }
 0x16f   :  { %v808_v12 = vmax.f32 %v779_v42, 0.0  ;;  %v3722_v45 = vpop.f32.mrf.mxu1  ;;  %2757 = vmatmul.msk.f32.gmra.mxu3 %vm234_vm1, %v522_v40  ;;  %2833 = vmatmul.msk.f32.gmra.mxu0 %vm101_vm0, %v1269_v11 }
 0x170   :  { %4548 = vst [vmem:[#allocation8_spill] sm:$0xff] %v3722_v45 }
 0x171   :  { %2785 = vmatmul.msk.f32.gmra.mxu2 %vm234_vm1, %v808_v12 }
 0x172   :  { %2804 = vmatmul.msk.f32.gmra.mxu1 %vm101_vm0, %v3551_v32  ;;  %v3741_v32 = vpop.permute.xlu0 %1560  ;;  %v1273_v6 = vpop.permute.xlu1 %1272 }
 0x174   :  { %v781_v48 = vpop.f32.mrf.mxu0 }
 0x175   :  { %v782_v53 = vadd.f32 %v3359_v29, %v781_v48 }
 0x177   :  { %v809_v55 = vmax.f32 %v782_v53, 0.0  ;;  %v3733_v56 = vpop.f32.mrf.mxu1  ;;  %2758 = vmatmul.msk.f32.gmra.mxu3 %vm234_vm1, %v523_v13  ;;  %2834 = vmatmul.msk.f32.gmra.mxu0 %vm101_vm0, %v1271_v47 }
 0x178   :  { %4549 = vst [vmem:[#allocation9_spill] sm:$0xff] %v3733_v56 }
 0x179   :  { %2786 = vmatmul.msk.f32.gmra.mxu2 %vm234_vm1, %v809_v55 }
 0x17a   :  { %2805 = vmatmul.msk.f32.gmra.mxu1 %vm101_vm0, %v3569_v37  ;;  %v3751_v37 = vpop.permute.xlu2 %1562  ;;  %v1275_v23 = vpop.permute.xlu0 %1274 }
 0x17b   :  { %v3762_v30 = vpop.permute.xlu1 %1564 }
 0x17c   :  { %v784_v26 = vpop.f32.mrf.mxu0 }
 0x17d   :  { %v785_v60 = vadd.f32 %v3359_v29, %v784_v26 }
 0x17f   :  { %v810_v61 = vmax.f32 %v785_v60, 0.0  ;;  %v3744_v22 = vpop.f32.mrf.mxu1  ;;  %2759 = vmatmul.msk.f32.gmra.mxu3 %vm234_vm1, %v524_v1  ;;  %2835 = vmatmul.msk.f32.gmra.mxu0 %vm101_vm0, %v1273_v6 }
 0x180   :  { %4550 = vst [vmem:[#allocation10_spill] sm:$0xff] %v3744_v22 }
 0x181   :  { %2787 = vmatmul.msk.f32.gmra.mxu2 %vm234_vm1, %v810_v61 }
 0x182   :  { %2806 = vmatmul.msk.f32.gmra.mxu1 %vm101_vm0, %v3586_v52  ;;  %v1277_v31 = vpop.permute.xlu2 %1276  ;;  %v3772_v2 = vpop.permute.xlu0 %1566 }
 0x183   :  { %v1279_v42 = vpop.permute.xlu1 %1278 }
 0x184   :  { %v787_v5 = vpop.f32.mrf.mxu0 }
 0x185   :  { %v788_v4 = vadd.f32 %v3359_v29, %v787_v5 }
 0x187   :  { %v811_v27 = vmax.f32 %v788_v4, 0.0  ;;  %v3754_v19 = vpop.f32.mrf.mxu1  ;;  %2836 = vmatmul.msk.f32.gmra.mxu0 %vm101_vm0, %v1275_v23 }
 0x188   :  { %4551 = vst [vmem:[#allocation11_spill] sm:$0xff] %v3754_v19 }
 0x189   :  { %2788 = vmatmul.msk.f32.gmra.mxu2 %vm234_vm1, %v811_v27 }
 0x18a   :  { %2807 = vmatmul.msk.f32.gmra.mxu1 %vm101_vm0, %v3601_v57  ;;  %v3760_v7 = vpop.f32.mrf.mxu3  ;;  %v3786_v50 = vpop.permute.xlu2 %1568 }
 0x18c   :  { %v790_v52 = vpop.f32.mrf.mxu0 }
 0x18d   :  { %v791_v10 = vadd.f32 %v3359_v29, %v790_v52 }
 0x18f   :  { %v812_v33 = vmax.f32 %v791_v10, 0.0  ;;  %v1041_v8 = vpop.f32.mrf.mxu1  ;;  %2837 = vmatmul.msk.f32.gmra.mxu0 %vm101_vm0, %v1277_v31 }
 0x190   :  { %v1042_v62 = vadd.f32 %v3359_v29, %v1041_v8 }
 0x191   :  { %2789 = vmatmul.msk.f32.gmra.mxu2 %vm234_vm1, %v812_v33 }
 0x192   :  { %v1089_v40 = vmax.f32 %v1042_v62, 0.0  ;;  %2856 = vmatmul.msk.f32.vlgmr.msrb.gmra.mxu1 %vm101_vm0, %v3618_v16  ;;  %v3770_v57 = vpop.f32.mrf.mxu3  ;;  %v1831_v6 = vpop.permute.xlu2 %1830 }
 0x194   :  { %2808 = vmatmul.msk.f32.vlgmr.msra.gmra.mxu3 %vm234_vm1, %v1089_v40  ;;  %v793_v11 = vpop.f32.mrf.mxu0 }
 0x195   :  { %v794_v12 = vadd.f32 %v3359_v29, %v793_v11  ;;  %2325 = vmatpush.msra.mxu3 %v3210_v14 }
 0x197   :  { %v813_v46 = vmax.f32 %v794_v12, 0.0  ;;  %v1044_v13 = vpop.f32.mrf.mxu1  ;;  %2838 = vmatmul.msk.f32.gmra.mxu0 %vm101_vm0, %v1279_v42  ;;  %2326 = vmatpush.msra.mxu3 %v3230_v18  ;;  %v1281_v18 = vpop.permute.xlu0 %1280 }
 0x198   :  { %v1045_v16 = vadd.f32 %v3359_v29, %v1044_v13 }
 0x199   :  { %2790 = vmatmul.msk.f32.gmra.mxu2 %vm234_vm1, %v813_v46  ;;  %2327 = vmatpush.msra.mxu3 %v3260_v20 }
 0x19a   :  { %v1090_v47 = vmax.f32 %v1045_v16, 0.0  ;;  %2857 = vmatmul.msk.f32.gmra.mxu1 %vm101_vm0, %v3638_v0  ;;  %v3784_v48 = vpop.f32.mrf.mxu3  ;;  %v3794_v0 = vpop.permute.xlu1 %1570 }
 0x19b   :  { %2328 = vmatpush.msra.mxu3 %v3302_v21  ;;  %v3818_v11 = vpop.permute.xlu2 %2122 }
 0x19c   :  { %2809 = vmatmul.msk.f32.gmra.mxu3 %vm234_vm1, %v1090_v47  ;;  %v796_v14 = vpop.f32.mrf.mxu0 }
 0x19d   :  { %v797_v53 = vadd.f32 %v3359_v29, %v796_v14 }
 0x19f   :  { %v814_v55 = vmax.f32 %v797_v53, 0.0  ;;  %v1047_v15 = vpop.f32.mrf.mxu1  ;;  %2839 = vmatmul.msk.f32.gmra.mxu0 %vm101_vm0, %v1281_v18  ;;  %v3805_v4 = vpop.permute.xlu0 %2120 }
 0x1a0   :  { %v1048_v20 = vadd.f32 %v3359_v29, %v1047_v15 }
 0x1a1   :  { %2791 = vmatmul.msk.f32.gmra.mxu2 %vm234_vm1, %v814_v55 }
 0x1a2   :  { %v1091_v1 = vmax.f32 %v1048_v20, 0.0  ;;  %2858 = vmatmul.msk.f32.gmra.mxu1 %vm101_vm0, %v3652_v28  ;;  %v3798_v21 = vpop.f32.mrf.mxu3  ;;  %v1833_v52 = vpop.permute.xlu1 %1832 }
 0x1a3   :  { %v1837_v15 = vpop.permute.xlu2 %1836 }
 0x1a4   :  { %2810 = vmatmul.msk.f32.gmra.mxu3 %vm234_vm1, %v1091_v1  ;;  %v1331_v26 = vpop.f32.mrf.mxu0 }
 0x1a5   :  { %v1332_v60 = vadd.f32 %v3359_v29, %v1331_v26 }
 0x1a7   :  { %v1379_v61 = vmax.f32 %v1332_v60, 0.0  ;;  %v1050_v5 = vpop.f32.mrf.mxu1  ;;  %2888 = vmatmul.msk.f32.vlgmr.msrb.gmra.mxu0 %vm101_vm0, %v1831_v6  ;;  %v1835_v12 = vpop.permute.xlu0 %1834 }
 0x1a8   :  { %v1051_v23 = vadd.f32 %v3359_v29, %v1050_v5 }
 0x1a9   :  { %2840 = vmatmul.msk.f32.vlgmr.msra.gmra.mxu2 %vm234_vm1, %v1379_v61 }
 0x1aa   :  { %v1092_v27 = vmax.f32 %v1051_v23, 0.0  ;;  %2859 = vmatmul.msk.f32.gmra.mxu1 %vm101_vm0, %v3662_v39  ;;  %v3809_v28 = vpop.f32.mrf.mxu3  ;;  %v3831_v53 = vpop.permute.xlu1 %2124 }
 0x1ac   :  { %2811 = vmatmul.msk.f32.gmra.mxu3 %vm234_vm1, %v1092_v27  ;;  %v3812_v31 = vpop.f32.mrf.mxu2  ;;  %v1334_v10 = vpop.f32.mrf.mxu0 }
 0x1ad   :  { %v1335_v33 = vadd.f32 %v3359_v29, %v1334_v10 }
 0x1af   :  { %v1380_v8 = vmax.f32 %v1335_v33, 0.0  ;;  %v1053_v62 = vpop.f32.mrf.mxu1  ;;  %2889 = vmatmul.msk.f32.gmra.mxu0 %vm101_vm0, %v1833_v52  ;;  %v3844_v5 = vpop.permute.xlu0 %2126 }
 0x1b0   :  { %v1054_v40 = vadd.f32 %v3359_v29, %v1053_v62 }
 0x1b1   :  { %2841 = vmatmul.msk.f32.gmra.mxu2 %vm234_vm1, %v1380_v8 }
 0x1b2   :  { %v1093_v39 = vmax.f32 %v1054_v40, 0.0  ;;  %2860 = vmatmul.msk.f32.gmra.mxu1 %vm101_vm0, %v3675_v44  ;;  %v3822_v42 = vpop.f32.mrf.mxu3  ;;  %v1839_v27 = vpop.permute.xlu1 %1838 }
 0x1b4   :  { %2812 = vmatmul.msk.f32.gmra.mxu3 %vm234_vm1, %v1093_v39  ;;  %v3825_v46 = vpop.f32.mrf.mxu2  ;;  %v1337_v13 = vpop.f32.mrf.mxu0 }
 0x1b5   :  { %v1338_v16 = vadd.f32 %v3359_v29, %v1337_v13  ;;  %v3857_v39 = vpop.permute.xlu2 %2128 }
 0x1b7   :  { %v1381_v47 = vmax.f32 %v1338_v16, 0.0  ;;  %v1056_v14 = vpop.f32.mrf.mxu1  ;;  %2890 = vmatmul.msk.f32.gmra.mxu0 %vm101_vm0, %v1835_v12  ;;  %v1841_v13 = vpop.permute.xlu0 %1840 }
 0x1b8   :  { %v1057_v18 = vadd.f32 %v3359_v29, %v1056_v14 }
 0x1b9   :  { %2842 = vmatmul.msk.f32.gmra.mxu2 %vm234_vm1, %v1381_v47 }
 0x1ba   :  { %v1094_v44 = vmax.f32 %v1057_v18, 0.0  ;;  %2861 = vmatmul.msk.f32.gmra.mxu1 %vm101_vm0, %v3686_v49  ;;  %v3835_v55 = vpop.f32.mrf.mxu3 }
 0x1bc   :  { %2813 = vmatmul.msk.f32.gmra.mxu3 %vm234_vm1, %v1094_v44  ;;  %v3838_v20 = vpop.f32.mrf.mxu2  ;;  %v1340_v1 = vpop.f32.mrf.mxu0 }
 0x1bd   :  { %v1341_v26 = vadd.f32 %v3359_v29, %v1340_v1 }
 0x1bf   :  { %v1382_v6 = vmax.f32 %v1341_v26, 0.0  ;;  %v1059_v60 = vpop.f32.mrf.mxu1  ;;  %2891 = vmatmul.msk.f32.gmra.mxu0 %vm101_vm0, %v1837_v15  ;;  %v3875_v15 = vpop.permute.xlu1 %2130 }
 0x1c0   :  { %v1060_v61 = vadd.f32 %v3359_v29, %v1059_v60 }
 0x1c1   :  { %2843 = vmatmul.msk.f32.gmra.mxu2 %vm234_vm1, %v1382_v6  ;;  %v1843_v6 = vpop.permute.xlu2 %1842 }
 0x1c2   :  { %v1095_v49 = vmax.f32 %v1060_v61, 0.0  ;;  %2862 = vmatmul.msk.f32.gmra.mxu1 %vm101_vm0, %v3697_v54  ;;  %v3848_v23 = vpop.f32.mrf.mxu3 }
 0x1c4   :  { %2814 = vmatmul.msk.f32.gmra.mxu3 %vm234_vm1, %v1095_v49  ;;  %v3851_v52 = vpop.f32.mrf.mxu2  ;;  %v1343_v10 = vpop.f32.mrf.mxu0 }
 0x1c5   :  { %v1344_v33 = vadd.f32 %v3359_v29, %v1343_v10 }
 0x1c7   :  { %v1383_v8 = vmax.f32 %v1344_v33, 0.0  ;;  %v1062_v62 = vpop.f32.mrf.mxu1  ;;  %2892 = vmatmul.msk.f32.gmra.mxu0 %vm101_vm0, %v1839_v27 }
 0x1c8   :  { %v1063_v40 = vadd.f32 %v3359_v29, %v1062_v62  ;;  %v3869_v29 = vld [vmem:[%s4540_s2] ss:$0 sm:$0xff]  ;;  %v1845_v62 = vpop.permute.xlu1 %1844 }
 0x1c9   :  { %2844 = vmatmul.msk.f32.gmra.mxu2 %vm234_vm1, %v1383_v8  ;;  %v3888_v8 = vpop.permute.xlu0 %2132 }
 0x1ca   :  { %v1096_v54 = vmax.f32 %v1063_v40, 0.0  ;;  %2863 = vmatmul.msk.f32.gmra.mxu1 %vm101_vm0, %v3708_v58  ;;  %v3861_v12 = vpop.f32.mrf.mxu3 }
 0x1cc   :  { %2815 = vmatmul.msk.f32.gmra.mxu3 %vm234_vm1, %v1096_v54  ;;  %v3864_v16 = vpop.f32.mrf.mxu2  ;;  %v1346_v47 = vpop.f32.mrf.mxu0 }
 0x1cd   :  { %v1347_v14 = vadd.f32 %v3869_v29, %v1346_v47 }
 0x1cf   :  { %v1384_v18 = vmax.f32 %v1347_v14, 0.0  ;;  %v1065_v44 = vpop.f32.mrf.mxu1  ;;  %2893 = vmatmul.msk.f32.gmra.mxu0 %vm101_vm0, %v1841_v13 }
 0x1d0   :  { %v1066_v58 = vadd.f32 %v3869_v29, %v1065_v44 }
 0x1d1   :  { %2845 = vmatmul.msk.f32.gmra.mxu2 %vm234_vm1, %v1384_v18 }
 0x1d2   :  { %v1097_v1 = vmax.f32 %v1066_v58, 0.0  ;;  %2864 = vmatmul.msk.f32.gmra.mxu1 %vm101_vm0, %v3717_v38  ;;  %v3879_v26 = vpop.f32.mrf.mxu3  ;;  %v3901_v58 = vpop.permute.xlu2 %2134 }
 0x1d4   :  { %2816 = vmatmul.msk.f32.gmra.mxu3 %vm234_vm1, %v1097_v1  ;;  %v3882_v60 = vpop.f32.mrf.mxu2  ;;  %v1349_v61 = vpop.f32.mrf.mxu0 }
 0x1d5   :  { %v1350_v49 = vadd.f32 %v3869_v29, %v1349_v61  ;;  %v1847_v1 = vpop.permute.xlu0 %1846 }
 0x1d7   :  { %v1385_v27 = vmax.f32 %v1350_v49, 0.0  ;;  %v1068_v10 = vpop.f32.mrf.mxu1  ;;  %2894 = vmatmul.msk.f32.gmra.mxu0 %vm101_vm0, %v1843_v6 }
 0x1d8   :  { %v1069_v33 = vadd.f32 %v3869_v29, %v1068_v10 }
 0x1d9   :  { %2846 = vmatmul.msk.f32.gmra.mxu2 %vm234_vm1, %v1385_v27 }
 0x1da   :  { %v1098_v38 = vmax.f32 %v1069_v33, 0.0  ;;  %2865 = vmatmul.msk.f32.gmra.mxu1 %vm101_vm0, %v3730_v25  ;;  %v3895_v13 = vpop.f32.mrf.mxu3 }
 0x1dc   :  { %2817 = vmatmul.msk.f32.gmra.mxu3 %vm234_vm1, %v1098_v38  ;;  %v3893_v40 = vpop.f32.mrf.mxu2  ;;  %v1352_v54 = vpop.f32.mrf.mxu0 }
 0x1dd   :  { %v1353_v47 = vadd.f32 %v3869_v29, %v1352_v54  ;;  %v1849_v54 = vpop.permute.xlu2 %1848 }
 0x1df   :  { %v1386_v14 = vmax.f32 %v1353_v47, 0.0  ;;  %v1071_v18 = vpop.f32.mrf.mxu1  ;;  %2895 = vmatmul.msk.f32.gmra.mxu0 %vm101_vm0, %v1845_v62  ;;  %v3914_v62 = vpop.permute.xlu1 %2136 }
 0x1e0   :  { %v1072_v44 = vadd.f32 %v3869_v29, %v1071_v18 }
 0x1e1   :  { %2847 = vmatmul.msk.f32.gmra.mxu2 %vm234_vm1, %v1386_v14 }
 0x1e2   :  { %v1099_v25 = vmax.f32 %v1072_v44, 0.0  ;;  %2866 = vmatmul.msk.f32.gmra.mxu1 %vm101_vm0, %v3741_v32  ;;  %v3909_v27 = vpop.f32.mrf.mxu3 }
 0x1e4   :  { %2818 = vmatmul.msk.f32.gmra.mxu3 %vm234_vm1, %v1099_v25  ;;  %v3906_v6 = vpop.f32.mrf.mxu2  ;;  %v1355_v61 = vpop.f32.mrf.mxu0 }
 0x1e5   :  { %v1356_v49 = vadd.f32 %v3869_v29, %v1355_v61 }
 0x1e7   :  { %v1387_v10 = vmax.f32 %v1356_v49, 0.0  ;;  %v1074_v33 = vpop.f32.mrf.mxu1  ;;  %2896 = vmatmul.msk.f32.gmra.mxu0 %vm101_vm0, %v1847_v1  ;;  %v3927_v49 = vpop.permute.xlu0 %2138 }
 0x1e8   :  { %v1075_v38 = vadd.f32 %v3869_v29, %v1074_v33 }
 0x1e9   :  { %2848 = vmatmul.msk.f32.gmra.mxu2 %vm234_vm1, %v1387_v10  ;;  %v1851_v10 = vpop.permute.xlu1 %1850 }
 0x1ea   :  { %v1100_v32 = vmax.f32 %v1075_v38, 0.0  ;;  %2867 = vmatmul.msk.f32.gmra.mxu1 %vm101_vm0, %v3751_v37  ;;  %v3924_v61 = vpop.f32.mrf.mxu3 }
 0x1ec   :  { %2819 = vmatmul.msk.f32.gmra.mxu3 %vm234_vm1, %v1100_v32  ;;  %v3919_v47 = vpop.f32.mrf.mxu2  ;;  %v1358_v14 = vpop.f32.mrf.mxu0 }
 0x1ed   :  { %v1359_v18 = vadd.f32 %v3869_v29, %v1358_v14 }
 0x1ef   :  { %v1388_v44 = vmax.f32 %v1359_v18, 0.0  ;;  %v1077_v25 = vpop.f32.mrf.mxu1  ;;  %2897 = vmatmul.msk.f32.gmra.mxu0 %vm101_vm0, %v1849_v54 }
 0x1f0   :  { %v1078_v1 = vadd.f32 %v3869_v29, %v1077_v25 }
 0x1f1   :  { %2849 = vmatmul.msk.f32.gmra.mxu2 %vm234_vm1, %v1388_v44  ;;  %v3938_v44 = vpop.permute.xlu2 %2140 }
 0x1f2   :  { %v1101_v37 = vmax.f32 %v1078_v1, 0.0  ;;  %2868 = vmatmul.msk.f32.gmra.mxu1 %vm101_vm0, %v3762_v30  ;;  %v3942_v30 = vpop.f32.mrf.mxu3  ;;  %v1853_v1 = vpop.permute.xlu0 %1852 }
 0x1f3   :  { %4552 = vst [vmem:[#allocation12_spill] sm:$0xff] %v3942_v30 }
 0x1f4   :  { %2820 = vmatmul.msk.f32.gmra.mxu3 %vm234_vm1, %v1101_v37  ;;  %v3932_v33 = vpop.f32.mrf.mxu2  ;;  %v1361_v38 = vpop.f32.mrf.mxu0 }
 0x1f5   :  { %v1362_v32 = vadd.f32 %v3869_v29, %v1361_v38 }
 0x1f7   :  { %v1389_v54 = vmax.f32 %v1362_v32, 0.0  ;;  %v1080_v14 = vpop.f32.mrf.mxu1  ;;  %2898 = vmatmul.msk.f32.gmra.mxu0 %vm101_vm0, %v1851_v10 }
 0x1f8   :  { %v1081_v18 = vadd.f32 %v3869_v29, %v1080_v14 }
 0x1f9   :  { %2850 = vmatmul.msk.f32.gmra.mxu2 %vm234_vm1, %v1389_v54 }
 0x1fa   :  { %v1102_v25 = vmax.f32 %v1081_v18, 0.0  ;;  %2869 = vmatmul.msk.f32.gmra.mxu1 %vm101_vm0, %v3772_v2  ;;  %v3951_v18 = vpop.permute.xlu1 %2142 }
 0x1fc   :  { %2821 = vmatmul.msk.f32.gmra.mxu3 %vm234_vm1, %v1102_v25  ;;  %v3945_v37 = vpop.f32.mrf.mxu2  ;;  %v1364_v38 = vpop.f32.mrf.mxu0 }
 0x1fd   :  { %v1365_v10 = vadd.f32 %v3869_v29, %v1364_v38  ;;  %v1855_v25 = vpop.permute.xlu2 %1854 }
 0x1ff   :  { %v1390_v32 = vmax.f32 %v1365_v10, 0.0  ;;  %v1083_v14 = vpop.f32.mrf.mxu1  ;;  %2899 = vmatmul.msk.f32.gmra.mxu0 %vm101_vm0, %v1853_v1  ;;  %v3958_v10 = vpop.f32.mrf.mxu3 }
 0x200   :  { %v1084_v54 = vadd.f32 %v3869_v29, %v1083_v14  ;;  %4553 = vst [vmem:[#allocation13_spill] sm:$0xff] %v3958_v10 }
 0x201   :  { %2851 = vmatmul.msk.f32.gmra.mxu2 %vm234_vm1, %v1390_v32 }
 0x202   :  { %v1103_v2 = vmax.f32 %v1084_v54, 0.0  ;;  %2870 = vmatmul.msk.f32.gmra.mxu1 %vm101_vm0, %v3786_v50  ;;  %v3964_v54 = vpop.permute.xlu0 %2144 }
 0x203   :  { %4554 = vst [vmem:[#allocation14_spill] sm:$0xff] %v3964_v54 }
 0x204   :  { %2822 = vmatmul.msk.f32.gmra.mxu3 %vm234_vm1, %v1103_v2  ;;  %v3956_v19 = vpop.f32.mrf.mxu2  ;;  %v1367_v38 = vpop.f32.mrf.mxu0 }
 0x205   :  { %v1368_v1 = vadd.f32 %v3869_v29, %v1367_v38  ;;  %v1857_v2 = vpop.permute.xlu1 %1856  ;;  %v3984_v56 = vpop.permute.xlu2 %2146 }
 0x206   :  { %4557 = vst [vmem:[#allocation17_spill] sm:$0xff] %v3984_v56 }
 0x207   :  { %v1391_v22 = vmax.f32 %v1368_v1, 0.0  ;;  %v1086_v14 = vpop.f32.mrf.mxu1  ;;  %2900 = vmatmul.msk.f32.gmra.mxu0 %vm101_vm0, %v1855_v25  ;;  %v3975_v25 = vld [vmem:[%s4542_s4] ss:$0 sm:$0xff] }
 0x208   :  { %v1087_v32 = vadd.f32 %v3869_v29, %v1086_v14  ;;  %v881_v30 = vadd.f32 %v3975_v25, %v3812_v31 }
 0x209   :  { %2852 = vmatmul.msk.f32.gmra.mxu2 %vm234_vm1, %v1391_v22  ;;  %v3977_v22 = vpop.f32.mrf.mxu3 }
 0x20a   :  { %v1104_v50 = vmax.f32 %v1087_v32, 0.0  ;;  %2871 = vmatmul.msk.f32.gmra.mxu1 %vm101_vm0, %v3794_v0  ;;  %4556 = vst [vmem:[#allocation16_spill] sm:$0xff] %v3977_v22  ;;  %v591_v0 = vadd.f32 %v3975_v25, %v3760_v7  ;;  %v928_v54 = vmax.f32 %v881_v30, 0.0  ;;  %v884_v30 = vadd.f32 %v3975_v25, %v3825_v46 }
 0x20c   :  { %2823 = vmatmul.msk.f32.gmra.mxu3 %vm234_vm1, %v1104_v50  ;;  %v3969_v10 = vpop.f32.mrf.mxu2  ;;  %v1370_v38 = vpop.f32.mrf.mxu0 }
 0x20d   :  { %4555 = vst [vmem:[#allocation15_spill] sm:$0xff] %v3969_v10  ;;  %v1371_v1 = vadd.f32 %v3869_v29, %v1370_v38  ;;  %v301_v38 = vadd.f32 %v3975_v25, %v3560_v9 }
 0x20f   :  { %v1392_v14 = vmax.f32 %v1371_v1, 0.0  ;;  %v1621_v32 = vpop.f32.mrf.mxu1  ;;  %2901 = vmatmul.msk.f32.gmra.mxu0 %vm101_vm0, %v1857_v2  ;;  %v1859_v2 = vpop.permute.xlu0 %1858  ;;  %v638_v1 = vmax.f32 %v591_v0, 0.0  ;;  %v348_v56 = vmax.f32 %v301_v38, 0.0 }
 0x210   :  { %v1622_v50 = vadd.f32 %v3869_v29, %v1621_v32 }
 0x211   :  { %2853 = vmatmul.msk.f32.gmra.mxu2 %vm234_vm1, %v1392_v14  ;;  %v654_v31 = vadd.f32 %v638_v1, %v348_v56  ;;  %v1861_v56 = vpop.permute.xlu2 %1860 }
 0x212   :  { %v1669_v22 = vmax.f32 %v1622_v50, 0.0  ;;  %2920 = vmatmul.msk.f32.vlgmr.msra.gmra.mxu1 %vm101_vm0, %v3805_v4  ;;  %v594_v4 = vadd.f32 %v3975_v25, %v3770_v57  ;;  %v304_v50 = vadd.f32 %v3975_v25, %v3578_v41 }
 0x213   :  { %v944_v38 = vadd.f32 %v928_v54, %v654_v31  ;;  %v929_v54 = vmax.f32 %v884_v30, 0.0  ;;  %v887_v30 = vadd.f32 %v3975_v25, %v3838_v20 }
 0x214   :  { %2872 = vmatmul.msk.f32.vlgmr.msrb.gmra.mxu3 %vm234_vm1, %v1669_v22  ;;  %v3993_v7 = vpop.f32.mrf.mxu2  ;;  %v1373_v32 = vpop.f32.mrf.mxu0  ;;  %v639_v57 = vmax.f32 %v594_v4, 0.0 }
 0x215   :  { %v1374_v14 = vadd.f32 %v3869_v29, %v1373_v32 }
 0x217   :  { %v1393_v10 = vmax.f32 %v1374_v14, 0.0  ;;  %v1170_v9 = vpop.f32.mrf.mxu3  ;;  %v1624_v45 = vpop.f32.mrf.mxu1  ;;  %2902 = vmatmul.msk.f32.gmra.mxu0 %vm101_vm0, %v1859_v2 }
 0x218   :  { %v1171_v0 = vadd.f32 %v3975_v25, %v1170_v9  ;;  %v1625_v22 = vadd.f32 %v3869_v29, %v1624_v45 }
 0x219   :  { %2854 = vmatmul.msk.f32.gmra.mxu2 %vm234_vm1, %v1393_v10  ;;  %v349_v10 = vmax.f32 %v304_v50, 0.0 }
 0x21a   :  { %v1218_v32 = vmax.f32 %v1171_v0, 0.0  ;;  %v1670_v14 = vmax.f32 %v1625_v22, 0.0  ;;  %2921 = vmatmul.msk.f32.gmra.mxu1 %vm101_vm0, %v3818_v11  ;;  %v597_v11 = vadd.f32 %v3975_v25, %v3784_v48 }
 0x21b   :  { %v655_v0 = vadd.f32 %v639_v57, %v349_v10  ;;  %v930_v10 = vmax.f32 %v887_v30, 0.0 }
 0x21c   :  { %v1234_v2 = vadd.f32 %v1218_v32, %v944_v38  ;;  %2873 = vmatmul.msk.f32.gmra.mxu3 %vm234_vm1, %v1670_v14  ;;  %v4009_v45 = vpop.f32.mrf.mxu2  ;;  %v1376_v1 = vpop.f32.mrf.mxu0  ;;  %v307_v38 = vadd.f32 %v3975_v25, %v3593_v43 }
 0x21d   :  { %v1377_v41 = vadd.f32 %v3869_v29, %v1376_v1  ;;  %v945_v50 = vadd.f32 %v929_v54, %v655_v0 }
 0x21f   :  { %v1394_v9 = vmax.f32 %v1377_v41, 0.0  ;;  %v1173_v31 = vpop.f32.mrf.mxu3  ;;  %v1627_v46 = vpop.f32.mrf.mxu1  ;;  %2903 = vmatmul.msk.f32.gmra.mxu0 %vm101_vm0, %v1861_v56  ;;  %v640_v56 = vmax.f32 %v597_v11, 0.0  ;;  %v350_v41 = vmax.f32 %v307_v38, 0.0  ;;  %v310_v11 = vadd.f32 %v3975_v25, %v3609_v51 }
 0x220   :  { %v1174_v4 = vadd.f32 %v3975_v25, %v1173_v31  ;;  %v1628_v22 = vadd.f32 %v3869_v29, %v1627_v46  ;;  %v600_v46 = vadd.f32 %v3975_v25, %v3798_v21 }
 0x221   :  { %2855 = vmatmul.msk.f32.gmra.mxu2 %vm234_vm1, %v1394_v9  ;;  %v656_v31 = vadd.f32 %v640_v56, %v350_v41 }
 0x222   :  { %v1219_v32 = vmax.f32 %v1174_v4, 0.0  ;;  %v1671_v14 = vmax.f32 %v1628_v22, 0.0  ;;  %2922 = vmatmul.msk.f32.gmra.mxu1 %vm101_vm0, %v3831_v53  ;;  %v890_v22 = vadd.f32 %v3975_v25, %v3851_v52  ;;  %v641_v30 = vmax.f32 %v600_v46, 0.0 }
 0x223   :  { %v946_v4 = vadd.f32 %v930_v10, %v656_v31  ;;  %v313_v46 = vadd.f32 %v3975_v25, %v3628_v59 }
 0x224   :  { %v4024_v48 = vadd.f32 %v1219_v32, %v945_v50  ;;  %2874 = vmatmul.msk.f32.gmra.mxu3 %vm234_vm1, %v1671_v14  ;;  %v4027_v57 = vpop.f32.mrf.mxu2  ;;  %v1911_v1 = vpop.f32.mrf.mxu0 }
 0x225   :  { %v1912_v43 = vadd.f32 %v3869_v29, %v1911_v1  ;;  %v351_v1 = vmax.f32 %v310_v11, 0.0  ;;  %v893_v11 = vadd.f32 %v3975_v25, %v3864_v16 }
 0x227   :  { %v1959_v54 = vmax.f32 %v1912_v43, 0.0  ;;  %v1176_v9 = vpop.f32.mrf.mxu3  ;;  %v1630_v20 = vpop.f32.mrf.mxu1  ;;  %v931_v43 = vmax.f32 %v890_v22, 0.0 }
 0x228   :  { %v1177_v53 = vadd.f32 %v3975_v25, %v1176_v9  ;;  %v1631_v0 = vadd.f32 %v3869_v29, %v1630_v20  ;;  %v657_v9 = vadd.f32 %v641_v30, %v351_v1 }
 0x229   :  { %2904 = vmatmul.msk.f32.vlgmr.msrb.gmra.mxu2 %vm234_vm1, %v1959_v54 }
 0x22a   :  { %v1220_v38 = vmax.f32 %v1177_v53, 0.0  ;;  %v1672_v50 = vmax.f32 %v1631_v0, 0.0  ;;  %2923 = vmatmul.msk.f32.gmra.mxu1 %vm101_vm0, %v3844_v5  ;;  %v603_v5 = vadd.f32 %v3975_v25, %v3809_v28  ;;  %v947_v0 = vadd.f32 %v931_v43, %v657_v9 }
 0x22c   :  { %v4041_v21 = vadd.f32 %v1220_v38, %v946_v4  ;;  %2875 = vmatmul.msk.f32.gmra.mxu3 %vm234_vm1, %v1672_v50  ;;  %v1460_v32 = vpop.f32.mrf.mxu2  ;;  %v1914_v14 = vpop.f32.mrf.mxu0  ;;  %v642_v28 = vmax.f32 %v603_v5, 0.0  ;;  %v896_v5 = vadd.f32 %v3975_v25, %v3882_v60 }
 0x22d   :  { %v1461_v51 = vadd.f32 %v3975_v25, %v1460_v32  ;;  %v1915_v56 = vadd.f32 %v3869_v29, %v1914_v14  ;;  %v352_v32 = vmax.f32 %v313_v46, 0.0  ;;  %v932_v14 = vmax.f32 %v893_v11, 0.0 }
 0x22f   :  { %v1508_v41 = vmax.f32 %v1461_v51, 0.0  ;;  %v1960_v52 = vmax.f32 %v1915_v56, 0.0  ;;  %v1179_v10 = vpop.f32.mrf.mxu3  ;;  %v1633_v54 = vpop.f32.mrf.mxu1  ;;  %v658_v43 = vadd.f32 %v642_v28, %v352_v32 }
 0x230   :  { %v1180_v20 = vadd.f32 %v3975_v25, %v1179_v10  ;;  %v1634_v31 = vadd.f32 %v3869_v29, %v1633_v54  ;;  %v316_v10 = vadd.f32 %v3975_v25, %v3645_v24 }
 0x231   :  { %v4052_v53 = vadd.f32 %v1508_v41, %v1234_v2  ;;  %2905 = vmatmul.msk.f32.gmra.mxu2 %vm234_vm1, %v1960_v52  ;;  %v948_v9 = vadd.f32 %v932_v14, %v658_v43  ;;  %v319_v14 = vadd.f32 %v3975_v25, %v3656_v35 }
 0x232   :  { %v1221_v4 = vmax.f32 %v1180_v20, 0.0  ;;  %v1673_v22 = vmax.f32 %v1634_v31, 0.0  ;;  %2924 = vmatmul.msk.f32.gmra.mxu1 %vm101_vm0, %v3857_v39  ;;  %v606_v39 = vadd.f32 %v3975_v25, %v3822_v42 }
 0x234   :  { %v4059_v38 = vadd.f32 %v1221_v4, %v947_v0  ;;  %2876 = vmatmul.msk.f32.gmra.mxu3 %vm234_vm1, %v1673_v22  ;;  %v1463_v50 = vpop.f32.mrf.mxu2  ;;  %v1917_v59 = vpop.f32.mrf.mxu0  ;;  %v643_v42 = vmax.f32 %v606_v39, 0.0  ;;  %v353_v4 = vmax.f32 %v316_v10, 0.0  ;;  %v933_v22 = vmax.f32 %v896_v5, 0.0 }
 0x235   :  { %v1464_v2 = vadd.f32 %v3975_v25, %v1463_v50  ;;  %v1918_v30 = vadd.f32 %v3869_v29, %v1917_v59  ;;  %v354_v10 = vmax.f32 %v319_v14, 0.0 }
 0x237   :  { %v1509_v51 = vmax.f32 %v1464_v2, 0.0  ;;  %v1961_v16 = vmax.f32 %v1918_v30, 0.0  ;;  %v1182_v56 = vpop.f32.mrf.mxu3  ;;  %v1636_v1 = vpop.f32.mrf.mxu1  ;;  %v659_v2 = vadd.f32 %v643_v42, %v353_v4 }
 0x238   :  { %v1183_v41 = vadd.f32 %v3975_v25, %v1182_v56  ;;  %v1637_v52 = vadd.f32 %v3869_v29, %v1636_v1  ;;  %v899_v56 = vadd.f32 %v3975_v25, %v3893_v40 }
 0x239   :  { %v4071_v54 = vadd.f32 %v1509_v51, %v4024_v48  ;;  %2906 = vmatmul.msk.f32.gmra.mxu2 %vm234_vm1, %v1961_v16  ;;  %v949_v16 = vadd.f32 %v933_v22, %v659_v2  ;;  %v902_v22 = vadd.f32 %v3975_v25, %v3906_v6 }
 0x23a   :  { %v1222_v20 = vmax.f32 %v1183_v41, 0.0  ;;  %v1674_v31 = vmax.f32 %v1637_v52, 0.0  ;;  %2925 = vmatmul.msk.f32.gmra.mxu1 %vm101_vm0, %v3875_v15  ;;  %v609_v15 = vadd.f32 %v3975_v25, %v3835_v55 }
 0x23c   :  { %v4078_v46 = vadd.f32 %v1222_v20, %v948_v9  ;;  %2877 = vmatmul.msk.f32.gmra.mxu3 %vm234_vm1, %v1674_v31  ;;  %v1466_v24 = vpop.f32.mrf.mxu2  ;;  %v1920_v0 = vpop.f32.mrf.mxu0  ;;  %v644_v55 = vmax.f32 %v609_v15, 0.0  ;;  %v934_v9 = vmax.f32 %v899_v56, 0.0 }
 0x23d   :  { %v1467_v48 = vadd.f32 %v3975_v25, %v1466_v24  ;;  %v1921_v11 = vadd.f32 %v3869_v29, %v1920_v0 }
 0x23e   :  { %v660_v42 = vadd.f32 %v644_v55, %v354_v10  ;;  %v325_v55 = vadd.f32 %v3975_v25, %v3678_v63 }
 0x23f   :  { %v1510_v28 = vmax.f32 %v1467_v48, 0.0  ;;  %v1962_v60 = vmax.f32 %v1921_v11, 0.0  ;;  %v1185_v50 = vpop.f32.mrf.mxu3  ;;  %v1639_v59 = vpop.f32.mrf.mxu1  ;;  %v322_v48 = vadd.f32 %v3975_v25, %v3667_v3 }
 0x240   :  { %v1186_v30 = vadd.f32 %v3975_v25, %v1185_v50  ;;  %v1640_v32 = vadd.f32 %v3869_v29, %v1639_v59  ;;  %v950_v4 = vadd.f32 %v934_v9, %v660_v42 }
 0x241   :  { %v4090_v51 = vadd.f32 %v1510_v28, %v4041_v21  ;;  %2907 = vmatmul.msk.f32.gmra.mxu2 %vm234_vm1, %v1962_v60  ;;  %v355_v15 = vmax.f32 %v322_v48, 0.0 }
 0x242   :  { %v1223_v1 = vmax.f32 %v1186_v30, 0.0  ;;  %v1675_v43 = vmax.f32 %v1640_v32, 0.0  ;;  %2926 = vmatmul.msk.f32.gmra.mxu1 %vm101_vm0, %v3888_v8  ;;  %v612_v8 = vadd.f32 %v3975_v25, %v3848_v23  ;;  %v935_v30 = vmax.f32 %v902_v22, 0.0 }
 0x243   :  { %v328_v22 = vadd.f32 %v3975_v25, %v3689_v17 }
 0x244   :  { %v4097_v39 = vadd.f32 %v1223_v1, %v949_v16  ;;  %2878 = vmatmul.msk.f32.gmra.mxu3 %vm234_vm1, %v1675_v43  ;;  %v1469_v35 = vpop.f32.mrf.mxu2  ;;  %v1923_v41 = vpop.f32.mrf.mxu0  ;;  %v645_v23 = vmax.f32 %v612_v8, 0.0 }
 0x245   :  { %v1470_v21 = vadd.f32 %v3975_v25, %v1469_v35  ;;  %v1924_v52 = vadd.f32 %v3869_v29, %v1923_v41 }
 0x246   :  { %v661_v56 = vadd.f32 %v645_v23, %v355_v15  ;;  %v908_v23 = vadd.f32 %v3975_v25, %v3932_v33 }
 0x247   :  { %v1511_v5 = vmax.f32 %v1470_v21, 0.0  ;;  %v1963_v40 = vmax.f32 %v1924_v52, 0.0  ;;  %v1188_v20 = vpop.f32.mrf.mxu3  ;;  %v1642_v31 = vpop.f32.mrf.mxu1  ;;  %v905_v21 = vadd.f32 %v3975_v25, %v3919_v47 }
 0x248   :  { %v1189_v24 = vadd.f32 %v3975_v25, %v1188_v20  ;;  %v1643_v0 = vadd.f32 %v3869_v29, %v1642_v31  ;;  %v951_v41 = vadd.f32 %v935_v30, %v661_v56  ;;  %v356_v20 = vmax.f32 %v325_v55, 0.0 }
 0x249   :  { %v4109_v11 = vadd.f32 %v1511_v5, %v4059_v38  ;;  %2908 = vmatmul.msk.f32.gmra.mxu2 %vm234_vm1, %v1963_v40  ;;  %v936_v31 = vmax.f32 %v905_v21, 0.0  ;;  %v357_v30 = vmax.f32 %v328_v22, 0.0  ;;  %v911_v21 = vadd.f32 %v3975_v25, %v3945_v37 }
 0x24a   :  { %v1224_v28 = vmax.f32 %v1189_v24, 0.0  ;;  %v1676_v60 = vmax.f32 %v1643_v0, 0.0  ;;  %2927 = vmatmul.msk.f32.gmra.mxu1 %vm101_vm0, %v3901_v58  ;;  %v615_v58 = vadd.f32 %v3975_v25, %v3861_v12 }
 0x24c   :  { %v4116_v50 = vadd.f32 %v1224_v28, %v950_v4  ;;  %2879 = vmatmul.msk.f32.gmra.mxu3 %vm234_vm1, %v1676_v60  ;;  %v1472_v3 = vpop.f32.mrf.mxu2  ;;  %v1926_v59 = vpop.f32.mrf.mxu0  ;;  %v646_v12 = vmax.f32 %v615_v58, 0.0 }
 0x24d   :  { %v1473_v38 = vadd.f32 %v3975_v25, %v1472_v3  ;;  %v1927_v2 = vadd.f32 %v3869_v29, %v1926_v59 }
 0x24e   :  { %v662_v0 = vadd.f32 %v646_v12, %v356_v20 }
 0x24f   :  { %v1512_v32 = vmax.f32 %v1473_v38, 0.0  ;;  %v1964_v6 = vmax.f32 %v1927_v2, 0.0  ;;  %v1191_v14 = vpop.f32.mrf.mxu3  ;;  %v1645_v16 = vpop.f32.mrf.mxu1 }
 0x250   :  { %v1192_v1 = vadd.f32 %v3975_v25, %v1191_v14  ;;  %v1646_v43 = vadd.f32 %v3869_v29, %v1645_v16  ;;  %v952_v60 = vadd.f32 %v936_v31, %v662_v0  ;;  %v334_v0 = vadd.f32 %v3975_v25, %v3711_v36 }
 0x251   :  { %v4128_v35 = vadd.f32 %v1512_v32, %v4078_v46  ;;  %2909 = vmatmul.msk.f32.gmra.mxu2 %vm234_vm1, %v1964_v6  ;;  %v937_v32 = vmax.f32 %v908_v23, 0.0 }
 0x252   :  { %v1225_v52 = vmax.f32 %v1192_v1, 0.0  ;;  %v1677_v10 = vmax.f32 %v1646_v43, 0.0  ;;  %2928 = vmatmul.msk.f32.gmra.mxu1 %vm101_vm0, %v3914_v62  ;;  %v618_v62 = vadd.f32 %v3975_v25, %v3879_v26  ;;  %v331_v43 = vadd.f32 %v3975_v25, %v3700_v34 }
 0x254   :  { %v4135_v9 = vadd.f32 %v1225_v52, %v951_v41  ;;  %2880 = vmatmul.msk.f32.gmra.mxu3 %vm234_vm1, %v1677_v10  ;;  %v1475_v63 = vpop.f32.mrf.mxu2  ;;  %v1929_v5 = vpop.f32.mrf.mxu0  ;;  %v647_v26 = vmax.f32 %v618_v62, 0.0 }
 0x255   :  { %v1476_v46 = vadd.f32 %v3975_v25, %v1475_v63  ;;  %v1930_v40 = vadd.f32 %v3869_v29, %v1929_v5 }
 0x256   :  { %v663_v56 = vadd.f32 %v647_v26, %v357_v30  ;;  %v4558_v30 = vld [vmem:[#allocation8_spill] sm:$0xff] }
 0x257   :  { %v1513_v42 = vmax.f32 %v1476_v46, 0.0  ;;  %v1965_v47 = vmax.f32 %v1930_v40, 0.0  ;;  %v1194_v8 = vpop.f32.mrf.mxu3  ;;  %v1648_v24 = vpop.f32.mrf.mxu1  ;;  %v358_v46 = vmax.f32 %v331_v43, 0.0  ;;  %v938_v40 = vmax.f32 %v911_v21, 0.0 }
 0x258   :  { %v1195_v48 = vadd.f32 %v3975_v25, %v1194_v8  ;;  %v1649_v4 = vadd.f32 %v3869_v29, %v1648_v24  ;;  %v953_v41 = vadd.f32 %v937_v32, %v663_v56  ;;  %v337_v32 = vadd.f32 %v3975_v25, %v4558_v30 }
 0x259   :  { %v4147_v28 = vadd.f32 %v1513_v42, %v4097_v39  ;;  %2910 = vmatmul.msk.f32.gmra.mxu2 %vm234_vm1, %v1965_v47 }
 0x25a   :  { %v1226_v3 = vmax.f32 %v1195_v48, 0.0  ;;  %v1678_v59 = vmax.f32 %v1649_v4, 0.0  ;;  %2929 = vmatmul.msk.f32.gmra.mxu1 %vm101_vm0, %v3927_v49  ;;  %v621_v49 = vadd.f32 %v3975_v25, %v3895_v13  ;;  %v914_v4 = vadd.f32 %v3975_v25, %v3956_v19 }
 0x25b   :  { %v627_v19 = vadd.f32 %v3975_v25, %v3924_v61 }
 0x25c   :  { %v4154_v38 = vadd.f32 %v1226_v3, %v952_v60  ;;  %2881 = vmatmul.msk.f32.gmra.mxu3 %vm234_vm1, %v1678_v59  ;;  %v1478_v17 = vpop.f32.mrf.mxu2  ;;  %v1932_v2 = vpop.f32.mrf.mxu0  ;;  %v648_v13 = vmax.f32 %v621_v49, 0.0  ;;  %v359_v3 = vmax.f32 %v334_v0, 0.0  ;;  %v939_v59 = vmax.f32 %v914_v4, 0.0  ;;  %v4560_v49 = vld [vmem:[#allocation14_spill] sm:$0xff] }
 0x25d   :  { %v1479_v39 = vadd.f32 %v3975_v25, %v1478_v17  ;;  %v1933_v15 = vadd.f32 %v3869_v29, %v1932_v2 }
 0x25e   :  { %v664_v47 = vadd.f32 %v648_v13, %v358_v46 }
 0x25f   :  { %v1514_v6 = vmax.f32 %v1479_v39, 0.0  ;;  %v1966_v33 = vmax.f32 %v1933_v15, 0.0  ;;  %v1197_v14 = vpop.f32.mrf.mxu3  ;;  %v1651_v16 = vpop.f32.mrf.mxu1 }
 0x260   :  { %v1198_v58 = vadd.f32 %v3975_v25, %v1197_v14  ;;  %v1652_v1 = vadd.f32 %v3869_v29, %v1651_v16  ;;  %v954_v48 = vadd.f32 %v938_v40, %v664_v47  ;;  %v4562_v40 = vld [vmem:[#allocation9_spill] sm:$0xff] }
 0x261   :  { %v4166_v55 = vadd.f32 %v1514_v6, %v4116_v50  ;;  %2911 = vmatmul.msk.f32.gmra.mxu2 %vm234_vm1, %v1966_v33  ;;  %v4559_v33 = vld [vmem:[#allocation15_spill] sm:$0xff] }
 0x262   :  { %v1227_v52 = vmax.f32 %v1198_v58, 0.0  ;;  %v1679_v10 = vmax.f32 %v1652_v1, 0.0  ;;  %2930 = vmatmul.msk.f32.gmra.mxu1 %vm101_vm0, %v3938_v44  ;;  %v624_v44 = vadd.f32 %v3975_v25, %v3909_v27  ;;  %v917_v14 = vadd.f32 %v3975_v25, %v4559_v33 }
 0x263   :  { %v650_v58 = vmax.f32 %v627_v19, 0.0 }
 0x264   :  { %v4173_v12 = vadd.f32 %v1227_v52, %v953_v41  ;;  %2882 = vmatmul.msk.f32.gmra.mxu3 %vm234_vm1, %v1679_v10  ;;  %v1481_v34 = vpop.f32.mrf.mxu2  ;;  %v1935_v63 = vpop.f32.mrf.mxu0  ;;  %v649_v27 = vmax.f32 %v624_v44, 0.0  ;;  %v360_v41 = vmax.f32 %v337_v32, 0.0  ;;  %v940_v21 = vmax.f32 %v917_v14, 0.0  ;;  %v4563_v44 = vld [vmem:[#allocation17_spill] sm:$0xff]  ;;  %v73_v14 = vld [vmem:[#allocation4 + $0x18] sm:$0xff] }
 0x265   :  { %v1482_v50 = vadd.f32 %v3975_v25, %v1481_v34  ;;  %v1936_v5 = vadd.f32 %v3869_v29, %v1935_v63  ;;  %v4561_v63 = vld [vmem:[#allocation12_spill] sm:$0xff]  ;;  %2489 = vmatpush.msra.mxu0 %v73_v14 }
 0x266   :  { %v665_v39 = vadd.f32 %v649_v27, %v359_v3  ;;  %v666_v34 = vadd.f32 %v650_v58, %v360_v41  ;;  %v4564_v3 = vld [vmem:[#allocation13_spill] sm:$0xff]  ;;  %v2151_v58 = vpop.permute.xlu0 %2150 }
 0x267   :  { %v1515_v20 = vmax.f32 %v1482_v50, 0.0  ;;  %v1967_v37 = vmax.f32 %v1936_v5, 0.0  ;;  %v1200_v31 = vpop.f32.mrf.mxu3  ;;  %v1654_v42 = vpop.f32.mrf.mxu1  ;;  %v630_v50 = vadd.f32 %v3975_v25, %v4561_v63 }
 0x268   :  { %v1201_v8 = vadd.f32 %v3975_v25, %v1200_v31  ;;  %v1655_v24 = vadd.f32 %v3869_v29, %v1654_v42  ;;  %v955_v6 = vadd.f32 %v939_v59, %v665_v39  ;;  %v920_v31 = vadd.f32 %v3975_v25, %v3993_v7 }
 0x269   :  { %v4185_v62 = vadd.f32 %v1515_v20, %v4135_v9  ;;  %2912 = vmatmul.msk.f32.gmra.mxu2 %vm234_vm1, %v1967_v37  ;;  %v340_v20 = vadd.f32 %v3975_v25, %v4562_v40  ;;  %v956_v37 = vadd.f32 %v940_v21, %v666_v34  ;;  %v633_v59 = vadd.f32 %v3975_v25, %v4564_v3  ;;  %v4566_v21 = vld [vmem:[#allocation16_spill] sm:$0xff]  ;;  %v4567_v34 = vld [vmem:[#allocation11_spill] sm:$0xff] }
 0x26a   :  { %v1228_v22 = vmax.f32 %v1201_v8, 0.0  ;;  %v1680_v60 = vmax.f32 %v1655_v24, 0.0  ;;  %2931 = vmatmul.msk.f32.gmra.mxu1 %vm101_vm0, %v3951_v18  ;;  %v651_v8 = vmax.f32 %v630_v50, 0.0  ;;  %v346_v63 = vadd.f32 %v3975_v25, %v4567_v34 }
 0x26b   :  { %v361_v4 = vmax.f32 %v340_v20, 0.0  ;;  %v652_v32 = vmax.f32 %v633_v59, 0.0 }
 0x26c   :  { %v4192_v23 = vadd.f32 %v1228_v22, %v954_v48  ;;  %2883 = vmatmul.msk.f32.gmra.mxu3 %vm234_vm1, %v1680_v60  ;;  %v1938_v36 = vpop.f32.mrf.mxu0  ;;  %v941_v22 = vmax.f32 %v920_v31, 0.0  ;;  %v2149_v60 = vpop.permute.xlu1 %2148 }
 0x26d   :  { %v1939_v9 = vadd.f32 %v3869_v29, %v1938_v36  ;;  %v667_v7 = vadd.f32 %v651_v8, %v361_v4 }
 0x26f   :  { %v1968_v26 = vmax.f32 %v1939_v9, 0.0  ;;  %v1203_v17 = vpop.f32.mrf.mxu3  ;;  %v1657_v2 = vpop.f32.mrf.mxu1  ;;  %v957_v19 = vadd.f32 %v941_v22, %v667_v7 }
 0x270   :  { %v1204_v15 = vadd.f32 %v3975_v25, %v1203_v17  ;;  %v1658_v18 = vadd.f32 %v3869_v29, %v1657_v2  ;;  %v4565_v2 = vld [vmem:[#allocation10_spill] sm:$0xff] }
 0x271   :  { %2913 = vmatmul.msk.f32.gmra.mxu2 %vm234_vm1, %v1968_v26  ;;  %v343_v39 = vadd.f32 %v3975_v25, %v4565_v2 }
 0x272   :  { %v1229_v16 = vmax.f32 %v1204_v15, 0.0  ;;  %v1681_v56 = vmax.f32 %v1658_v18, 0.0  ;;  %2932 = vmatmul.msk.f32.gmra.mxu1 %vm101_vm0, %v4560_v49  ;;  %v923_v15 = vadd.f32 %v3975_v25, %v4009_v45 }
 0x274   :  { %v4207_v61 = vadd.f32 %v1229_v16, %v955_v6  ;;  %2884 = vmatmul.msk.f32.gmra.mxu3 %vm234_vm1, %v1681_v56  ;;  %v1941_v1 = vpop.f32.mrf.mxu0  ;;  %v362_v56 = vmax.f32 %v343_v39, 0.0  ;;  %v942_v49 = vmax.f32 %v923_v15, 0.0 }
 0x275   :  { %v1942_v43 = vadd.f32 %v3869_v29, %v1941_v1 }
 0x276   :  { %v668_v41 = vadd.f32 %v652_v32, %v362_v56  ;;  %v4271_v32 = vld [vmem:[%s4540_s2] ss:$0 sm:$0xff]  ;;  %v1484_v56 = vpop.f32.mrf.mxu2 }
 0x277   :  { %v1969_v52 = vmax.f32 %v1942_v43, 0.0  ;;  %v1206_v10 = vpop.f32.mrf.mxu3  ;;  %v1660_v13 = vpop.f32.mrf.mxu1 }
 0x278   :  { %v1207_v5 = vadd.f32 %v3975_v25, %v1206_v10  ;;  %v1661_v46 = vadd.f32 %v3869_v29, %v1660_v13  ;;  %v958_v50 = vadd.f32 %v942_v49, %v668_v41 }
 0x279   :  { %2914 = vmatmul.msk.f32.gmra.mxu2 %vm234_vm1, %v1969_v52  ;;  %v636_v52 = vadd.f32 %v3975_v25, %v4566_v21 }
 0x27a   :  { %v1230_v42 = vmax.f32 %v1207_v5, 0.0  ;;  %v1682_v47 = vmax.f32 %v1661_v46, 0.0  ;;  %2933 = vmatmul.msk.f32.gmra.mxu1 %vm101_vm0, %v4563_v44  ;;  %v926_v5 = vadd.f32 %v3975_v25, %v4027_v57 }
 0x27b   :  { %v653_v20 = vmax.f32 %v636_v52, 0.0 }
 0x27c   :  { %v4222_v24 = vadd.f32 %v1230_v42, %v956_v37  ;;  %2885 = vmatmul.msk.f32.gmra.mxu3 %vm234_vm1, %v1682_v47  ;;  %v1944_v0 = vpop.f32.mrf.mxu0  ;;  %v363_v47 = vmax.f32 %v346_v63, 0.0  ;;  %v943_v44 = vmax.f32 %v926_v5, 0.0 }
 0x27d   :  { %v1945_v48 = vadd.f32 %v3869_v29, %v1944_v0 }
 0x27e   :  { %v669_v4 = vadd.f32 %v653_v20, %v363_v47 }
 0x27f   :  { %v1970_v27 = vmax.f32 %v1945_v48, 0.0  ;;  %v1209_v36 = vpop.f32.mrf.mxu3  ;;  %v1663_v9 = vpop.f32.mrf.mxu1 }
 0x280   :  { %v1210_v26 = vadd.f32 %v3975_v25, %v1209_v36  ;;  %v1664_v17 = vadd.f32 %v3869_v29, %v1663_v9 }
 0x281   :  { %2915 = vmatmul.msk.f32.gmra.mxu2 %vm234_vm1, %v1970_v27 }
 0x282   :  { %v1231_v18 = vmax.f32 %v1210_v26, 0.0  ;;  %v1683_v30 = vmax.f32 %v1664_v17, 0.0  ;;  %2934 = vmatmul.msk.f32.gmra.mxu1 %vm101_vm0, %v2149_v60  ;;  %v959_v60 = vadd.f32 %v943_v44, %v669_v4 }
 0x284   :  { %v4236_v6 = vadd.f32 %v1231_v18, %v957_v19  ;;  %2886 = vmatmul.msk.f32.gmra.mxu3 %vm234_vm1, %v1683_v30  ;;  %v1947_v33 = vpop.f32.mrf.mxu0 }
 0x285   :  { %v1948_v16 = vadd.f32 %v3869_v29, %v1947_v33 }
 0x287   :  { %v1971_v1 = vmax.f32 %v1948_v16, 0.0  ;;  %v1212_v43 = vpop.f32.mrf.mxu3  ;;  %v1666_v45 = vpop.f32.mrf.mxu1 }
 0x288   :  { %v1213_v10 = vadd.f32 %v3975_v25, %v1212_v43  ;;  %v1667_v13 = vadd.f32 %v3869_v29, %v1666_v45  ;;  %v72_v45 = vld [vmem:[#allocation4 + $0x10] sm:$0xff] }
 0x289   :  { %2916 = vmatmul.msk.f32.gmra.mxu2 %vm234_vm1, %v1971_v1  ;;  %2490 = vmatpush.msra.mxu0 %v72_v45 }
 0x28a   :  { %v1232_v46 = vmax.f32 %v1213_v10, 0.0  ;;  %v1684_v40 = vmax.f32 %v1667_v13, 0.0  ;;  %2935 = vmatmul.msk.f32.gmra.mxu1 %vm101_vm0, %v2151_v58  ;;  %v1487_v13 = vpop.f32.mrf.mxu2 }
 0x28c   :  { %v4250_v37 = vadd.f32 %v1232_v46, %v958_v50  ;;  %2887 = vmatmul.msk.f32.gmra.mxu3 %vm234_vm1, %v1684_v40  ;;  %v1950_v31 = vpop.f32.mrf.mxu0 }
 0x28d   :  { %v1951_v42 = vadd.f32 %v3869_v29, %v1950_v31 }
 0x28f   :  { %v1972_v8 = vmax.f32 %v1951_v42, 0.0  ;;  %v1215_v0 = vpop.f32.mrf.mxu3  ;;  %v2201_v48 = vpop.f32.mrf.mxu1 }
 0x290   :  { %v1216_v57 = vadd.f32 %v3975_v25, %v1215_v0  ;;  %v2202_v22 = vadd.f32 %v3869_v29, %v2201_v48 }
 0x291   :  { %2917 = vmatmul.msk.f32.gmra.mxu2 %vm234_vm1, %v1972_v8 }
 0x292   :  { %v1233_v27 = vmax.f32 %v1216_v57, 0.0  ;;  %v2249_v36 = vmax.f32 %v2202_v22, 0.0  ;;  %v1490_v42 = vpop.f32.mrf.mxu2 }
 0x294   :  { %v4257_v9 = vadd.f32 %v1233_v27, %v959_v60  ;;  %2936 = vmatmul.msk.f32.vlgmr.msra.gmra.mxu3 %vm234_vm1, %v2249_v36  ;;  %v1953_v7 = vpop.f32.mrf.mxu0 }
 0x295   :  { %v1954_v3 = vadd.f32 %v3869_v29, %v1953_v7 }
 0x297   :  { %v1973_v59 = vmax.f32 %v1954_v3, 0.0  ;;  %v1750_v26 = vpop.f32.mrf.mxu3  ;;  %v2204_v17 = vpop.f32.mrf.mxu1 }
 0x298   :  { %v1751_v2 = vadd.f32 %v3975_v25, %v1750_v26  ;;  %v2205_v39 = vadd.f32 %v3869_v29, %v2204_v17  ;;  %v71_v26 = vld [vmem:[#allocation4 + $0x8] sm:$0xff] }
 0x299   :  { %2918 = vmatmul.msk.f32.gmra.mxu2 %vm234_vm1, %v1973_v59  ;;  %2491 = vmatpush.msra.mxu0 %v71_v26 }
 0x29a   :  { %v1798_v19 = vmax.f32 %v1751_v2, 0.0  ;;  %v2250_v15 = vmax.f32 %v2205_v39, 0.0  ;;  %v1493_v22 = vpop.f32.mrf.mxu2 }
 0x29c   :  { %v4265_v18 = vadd.f32 %v1798_v19, %v4052_v53  ;;  %2937 = vmatmul.msk.f32.gmra.mxu3 %vm234_vm1, %v2250_v15  ;;  %v1956_v30 = vpop.f32.mrf.mxu0 }
 0x29d   :  { %v1957_v33 = vadd.f32 %v4271_v32, %v1956_v30 }
 0x29f   :  { %v1974_v14 = vmax.f32 %v1957_v33, 0.0  ;;  %v1753_v16 = vpop.f32.mrf.mxu3  ;;  %v2207_v29 = vpop.f32.mrf.mxu1 }
 0x2a0   :  { %v1754_v49 = vadd.f32 %v3975_v25, %v1753_v16  ;;  %v2208_v58 = vadd.f32 %v4271_v32, %v2207_v29 }
 0x2a1   :  { %2919 = vmatmul.msk.f32.gmra.mxu2 %vm234_vm1, %v1974_v14 }
 0x2a2   :  { %v1799_v53 = vmax.f32 %v1754_v49, 0.0  ;;  %v2251_v1 = vmax.f32 %v2208_v58, 0.0  ;;  %v1496_v2 = vpop.f32.mrf.mxu2  ;;  %v1485_v49 = vadd.f32 %v3975_v25, %v1484_v56 }
 0x2a4   :  { %v4278_v43 = vadd.f32 %v1799_v53, %v4071_v54  ;;  %2938 = vmatmul.msk.f32.gmra.mxu3 %vm234_vm1, %v2251_v1 }
 0x2a7   :  { %v1756_v41 = vpop.f32.mrf.mxu3  ;;  %v2210_v21 = vpop.f32.mrf.mxu1 }
 0x2a8   :  { %v1757_v52 = vadd.f32 %v3975_v25, %v1756_v41  ;;  %v2211_v10 = vadd.f32 %v4271_v32, %v2210_v21 }
 0x2aa   :  { %v1800_v34 = vmax.f32 %v1757_v52, 0.0  ;;  %v2252_v63 = vmax.f32 %v2211_v10, 0.0  ;;  %v1499_v58 = vpop.f32.mrf.mxu2 }
 0x2ac   :  { %v4284_v50 = vadd.f32 %v1800_v34, %v4090_v51  ;;  %2939 = vmatmul.msk.f32.gmra.mxu3 %vm234_vm1, %v2252_v63  ;;  %v1488_v63 = vadd.f32 %v3975_v25, %v1487_v13 }
 0x2af   :  { %v1759_v54 = vpop.f32.mrf.mxu3  ;;  %v2213_v5 = vpop.f32.mrf.mxu1 }
 0x2b0   :  { %v1760_v46 = vadd.f32 %v3975_v25, %v1759_v54  ;;  %v2214_v40 = vadd.f32 %v4271_v32, %v2213_v5 }
 0x2b2   :  { %v1801_v20 = vmax.f32 %v1760_v46, 0.0  ;;  %v2253_v31 = vmax.f32 %v2214_v40, 0.0  ;;  %v1502_v5 = vpop.f32.mrf.mxu2 }
 0x2b4   :  { %v4290_v47 = vadd.f32 %v1801_v20, %v4109_v11  ;;  %2940 = vmatmul.msk.f32.gmra.mxu3 %vm234_vm1, %v2253_v31 }
 0x2b7   :  { %v1762_v44 = vpop.f32.mrf.mxu3  ;;  %v2216_v8 = vpop.f32.mrf.mxu1 }
 0x2b8   :  { %v1763_v51 = vadd.f32 %v3975_v25, %v1762_v44  ;;  %v2217_v0 = vadd.f32 %v4271_v32, %v2216_v8 }
 0x2ba   :  { %v1802_v48 = vmax.f32 %v1763_v51, 0.0  ;;  %v2254_v4 = vmax.f32 %v2217_v0, 0.0 }
 0x2bc   :  { %v4296_v57 = vadd.f32 %v1802_v48, %v4128_v35  ;;  %2941 = vmatmul.msk.f32.gmra.mxu3 %vm234_vm1, %v2254_v4  ;;  %v70_v48 = vld [vmem:[#allocation4] sm:$0xff] }
 0x2bd   :  { %2492 = vmatpush.msra.mxu0 %v70_v48 }
 0x2bf   :  { %v1765_v60 = vpop.f32.mrf.mxu3  ;;  %v2219_v27 = vpop.f32.mrf.mxu1 }
 0x2c0   :  { %v1766_v11 = vadd.f32 %v3975_v25, %v1765_v60  ;;  %v2220_v36 = vadd.f32 %v4271_v32, %v2219_v27  ;;  %v1505_v60 = vpop.f32.mrf.mxu2 }
 0x2c2   :  { %v1803_v7 = vmax.f32 %v1766_v11, 0.0  ;;  %v2255_v3 = vmax.f32 %v2220_v36, 0.0 }
 0x2c4   :  { %v4302_v59 = vadd.f32 %v1803_v7, %v4147_v28  ;;  %2942 = vmatmul.msk.f32.gmra.mxu3 %vm234_vm1, %v2255_v3 }
 0x2c7   :  { %v1768_v35 = vpop.f32.mrf.mxu3  ;;  %v2222_v17 = vpop.f32.mrf.mxu1 }
 0x2c8   :  { %v1769_v39 = vadd.f32 %v3975_v25, %v1768_v35  ;;  %v2223_v19 = vadd.f32 %v4271_v32, %v2222_v17 }
 0x2ca   :  { %v1804_v15 = vmax.f32 %v1769_v39, 0.0  ;;  %v2256_v30 = vmax.f32 %v2223_v19, 0.0 }
 0x2cc   :  { %v4308_v33 = vadd.f32 %v1804_v15, %v4166_v55  ;;  %2943 = vmatmul.msk.f32.gmra.mxu3 %vm234_vm1, %v2256_v30  ;;  %v1516_v55 = vmax.f32 %v1485_v49, 0.0  ;;  %v4342_v15 = vld [vmem:[%s4542_s4] ss:$0 sm:$0xff] }
 0x2ce   :  { %v1532_v34 = vadd.f32 %v1516_v55, %v4154_v38  ;;  %v1491_v38 = vadd.f32 %v3975_v25, %v1490_v42  ;;  %v1494_v42 = vadd.f32 %v3975_v25, %v1493_v22  ;;  %v1497_v22 = vadd.f32 %v4342_v15, %v1496_v2 }
 0x2cf   :  { %v1771_v28 = vpop.f32.mrf.mxu3  ;;  %v2225_v14 = vpop.f32.mrf.mxu1 }
 0x2d0   :  { %v1772_v16 = vadd.f32 %v3975_v25, %v1771_v28  ;;  %v2226_v29 = vadd.f32 %v4271_v32, %v2225_v14  ;;  %v1518_v4 = vmax.f32 %v1491_v38, 0.0  ;;  %v1519_v17 = vmax.f32 %v1494_v42, 0.0  ;;  %v2040_v28 = vpop.f32.mrf.mxu2 }
 0x2d1   :  { %v1520_v49 = vmax.f32 %v1497_v22, 0.0 }
 0x2d2   :  { %v1805_v53 = vmax.f32 %v1772_v16, 0.0  ;;  %v2257_v1 = vmax.f32 %v2226_v29, 0.0 }
 0x2d4   :  { %v4315_v45 = vadd.f32 %v1805_v53, %v4185_v62  ;;  %2944 = vmatmul.msk.f32.gmra.mxu3 %vm234_vm1, %v2257_v1  ;;  %v1517_v62 = vmax.f32 %v1488_v63, 0.0 }
 0x2d6   :  { %v1533_v8 = vadd.f32 %v1517_v62, %v4173_v12  ;;  %v1534_v12 = vadd.f32 %v1518_v4, %v4192_v23 }
 0x2d7   :  { %v1774_v41 = vpop.f32.mrf.mxu3  ;;  %v2228_v21 = vpop.f32.mrf.mxu1 }
 0x2d8   :  { %v1775_v52 = vadd.f32 %v3975_v25, %v1774_v41  ;;  %v2229_v10 = vadd.f32 %v4271_v32, %v2228_v21  ;;  %v1536_v21 = vadd.f32 %v1520_v49, %v4222_v24  ;;  %v2043_v2 = vpop.f32.mrf.mxu2  ;;  %v1503_v24 = vadd.f32 %v4342_v15, %v1502_v5 }
 0x2d9   :  { %v2044_v22 = vadd.f32 %v4342_v15, %v2043_v2 }
 0x2da   :  { %v1806_v56 = vmax.f32 %v1775_v52, 0.0  ;;  %v2258_v54 = vmax.f32 %v2229_v10, 0.0  ;;  %v1500_v52 = vadd.f32 %v4342_v15, %v1499_v58  ;;  %v1522_v38 = vmax.f32 %v1503_v24, 0.0 }
 0x2db   :  { %v2089_v49 = vmax.f32 %v2044_v22, 0.0 }
 0x2dc   :  { %v4322_v46 = vadd.f32 %v1806_v56, %v1532_v34  ;;  %2945 = vmatmul.msk.f32.gmra.mxu3 %vm234_vm1, %v2258_v54  ;;  %v1521_v63 = vmax.f32 %v1500_v52, 0.0  ;;  %v1538_v5 = vadd.f32 %v1522_v38, %v4250_v37 }
 0x2df   :  { %v1777_v40 = vpop.f32.mrf.mxu3  ;;  %v2231_v20 = vpop.f32.mrf.mxu1 }
 0x2e0   :  { %v1778_v31 = vadd.f32 %v3975_v25, %v1777_v40  ;;  %v2232_v44 = vadd.f32 %v4271_v32, %v2231_v20  ;;  %v1537_v20 = vadd.f32 %v1521_v63, %v4236_v6 }
 0x2e2   :  { %v1807_v51 = vmax.f32 %v1778_v31, 0.0  ;;  %v2259_v13 = vmax.f32 %v2232_v44, 0.0 }
 0x2e4   :  { %v4329_v0 = vadd.f32 %v1807_v51, %v1533_v8  ;;  %2946 = vmatmul.msk.f32.gmra.mxu3 %vm234_vm1, %v2259_v13  ;;  %v2046_v8 = vpop.f32.mrf.mxu2  ;;  %v77_v51 = vld [vmem:[%s4545_s7 + $0x18] sm:$0xff] }
 0x2e5   :  { %2621 = vmatpush.msra.mxu2 %v77_v51 }
 0x2e7   :  { %v1780_v27 = vpop.f32.mrf.mxu3  ;;  %v2234_v11 = vpop.f32.mrf.mxu1 }
 0x2e8   :  { %v1781_v36 = vadd.f32 %v3975_v25, %v1780_v27  ;;  %v2235_v7 = vadd.f32 %v4271_v32, %v2234_v11  ;;  %v1535_v25 = vadd.f32 %v1519_v17, %v4207_v61  ;;  %v1506_v27 = vadd.f32 %v4342_v15, %v1505_v60 }
 0x2ea   :  { %v1808_v3 = vmax.f32 %v1781_v36, 0.0  ;;  %v2260_v26 = vmax.f32 %v2235_v7, 0.0 }
 0x2ec   :  { %v4336_v35 = vadd.f32 %v1808_v3, %v1534_v12  ;;  %2947 = vmatmul.msk.f32.gmra.mxu3 %vm234_vm1, %v2260_v26  ;;  %v1523_v12 = vmax.f32 %v1506_v27, 0.0  ;;  %v2049_v42 = vpop.f32.mrf.mxu2 }
 0x2ee   :  { %v1539_v17 = vadd.f32 %v1523_v12, %v4257_v9 }
 0x2ef   :  { %v1783_v39 = vpop.f32.mrf.mxu3  ;;  %v2237_v19 = vpop.f32.mrf.mxu1 }
 0x2f0   :  { %v1784_v30 = vadd.f32 %v4342_v15, %v1783_v39  ;;  %v2238_v23 = vadd.f32 %v4271_v32, %v2237_v19  ;;  %v2041_v39 = vadd.f32 %v4342_v15, %v2040_v28  ;;  %v2105_v28 = vadd.f32 %v2089_v49, %v4278_v43 }
 0x2f1   :  { %v2050_v43 = vadd.f32 %v4342_v15, %v2049_v42 }
 0x2f2   :  { %v1809_v14 = vmax.f32 %v1784_v30, 0.0  ;;  %v2261_v16 = vmax.f32 %v2238_v23, 0.0  ;;  %v2088_v37 = vmax.f32 %v2041_v39, 0.0 }
 0x2f4   :  { %v4348_v29 = vadd.f32 %v1809_v14, %v1535_v25  ;;  %2948 = vmatmul.msk.f32.gmra.mxu3 %vm234_vm1, %v2261_v16  ;;  %v2052_v23 = vpop.f32.mrf.mxu2  ;;  %v2104_v25 = vadd.f32 %v2088_v37, %v4265_v18 }
 0x2f5   :  { %v2053_v38 = vadd.f32 %v4342_v15, %v2052_v23  ;;  %v75_v23 = vld [vmem:[%s4545_s7 + $0x8] sm:$0xff] }
 0x2f7   :  { %v1786_v53 = vpop.f32.mrf.mxu3  ;;  %v2240_v1 = vpop.f32.mrf.mxu1 }
 0x2f8   :  { %v1787_v55 = vadd.f32 %v4342_v15, %v1786_v53  ;;  %v2241_v41 = vadd.f32 %v4271_v32, %v2240_v1 }
 0x2fa   :  { %v1810_v61 = vmax.f32 %v1787_v55, 0.0  ;;  %v2262_v10 = vmax.f32 %v2241_v41, 0.0  ;;  %v2047_v55 = vadd.f32 %v4342_v15, %v2046_v8 }
 0x2fc   :  { %v4355_v34 = vadd.f32 %v1810_v61, %v1536_v21  ;;  %2949 = vmatmul.msk.f32.gmra.mxu3 %vm234_vm1, %v2262_v10  ;;  %v2055_v21 = vpop.f32.mrf.mxu2  ;;  %v2090_v61 = vmax.f32 %v2047_v55, 0.0  ;;  %v76_v10 = vld [vmem:[%s4545_s7 + $0x10] sm:$0xff] }
 0x2fd   :  { %2622 = vmatpush.msra.mxu2 %v76_v10 }
 0x2ff   :  { %v1789_v56 = vpop.f32.mrf.mxu3  ;;  %v2243_v54 = vpop.f32.mrf.mxu1  ;;  %2623 = vmatpush.msra.mxu2 %v75_v23 }
 0x300   :  { %v1790_v62 = vadd.f32 %v4342_v15, %v1789_v56  ;;  %v2244_v40 = vadd.f32 %v4271_v32, %v2243_v54  ;;  %v2106_v56 = vadd.f32 %v2090_v61, %v4284_v50 }
 0x302   :  { %v1811_v31 = vmax.f32 %v1790_v62, 0.0  ;;  %v2263_v58 = vmax.f32 %v2244_v40, 0.0 }
 0x304   :  { %v4362_v44 = vadd.f32 %v1811_v31, %v1537_v20  ;;  %2950 = vmatmul.msk.f32.gmra.mxu3 %vm234_vm1, %v2263_v58  ;;  %v2058_v40 = vpop.f32.mrf.mxu2  ;;  %v2091_v20 = vmax.f32 %v2050_v43, 0.0 }
 0x306   :  { %v2107_v8 = vadd.f32 %v2091_v20, %v4290_v47 }
 0x307   :  { %v1792_v13 = vpop.f32.mrf.mxu3  ;;  %v2246_v48 = vpop.f32.mrf.mxu1 }
 0x308   :  { %v1793_v4 = vadd.f32 %v4342_v15, %v1792_v13  ;;  %v2247_v6 = vadd.f32 %v4271_v32, %v2246_v48  ;;  %v2092_v48 = vmax.f32 %v2053_v38, 0.0 }
 0x30a   :  { %v1812_v11 = vmax.f32 %v1793_v4, 0.0  ;;  %v2264_v36 = vmax.f32 %v2247_v6, 0.0  ;;  %v2108_v27 = vadd.f32 %v2092_v48, %v4296_v57  ;;  %v74_v48 = vld [vmem:[%s4545_s7] sm:$0xff] }
 0x30b   :  { %2624 = vmatpush.msra.mxu2 %v74_v48 }
 0x30c   :  { %v4372_v7 = vadd.f32 %v1812_v11, %v1538_v5  ;;  %2951 = vmatmul.msk.f32.gmra.mxu3 %vm234_vm1, %v2264_v36  ;;  %v2061_v4 = vpop.f32.mrf.mxu2  ;;  %v2056_v11 = vadd.f32 %v4342_v15, %v2055_v21 }
 0x30e   :  { %v2093_v42 = vmax.f32 %v2056_v11, 0.0 }
 0x30f   :  { %v1795_v3 = vpop.f32.mrf.mxu3 }
 0x310   :  { %v1796_v26 = vadd.f32 %v4342_v15, %v1795_v3  ;;  %v2109_v39 = vadd.f32 %v2093_v42, %v4302_v59  ;;  %v2062_v59 = vadd.f32 %v4342_v15, %v2061_v4 }
 0x312   :  { %v1813_v32 = vmax.f32 %v1796_v26, 0.0 }
 0x314   :  { %v4378_v19 = vadd.f32 %v1813_v32, %v1539_v17  ;;  %v2064_v17 = vpop.f32.mrf.mxu2  ;;  %v2059_v32 = vadd.f32 %v4342_v15, %v2058_v40 }
 0x315   :  { %v2065_v21 = vadd.f32 %v4342_v15, %v2064_v17 }
 0x317   :  { %v2330_v60 = vpop.f32.mrf.mxu3 }
 0x318   :  { %v2331_v30 = vadd.f32 %v4342_v15, %v2330_v60 }
 0x31a   :  { %v2378_v14 = vmax.f32 %v2331_v30, 0.0  ;;  %v2094_v30 = vmax.f32 %v2059_v32, 0.0 }
 0x31c   :  { %v2394_v16 = vadd.f32 %v2378_v14, %v2104_v25  ;;  %v2110_v14 = vadd.f32 %v2094_v30, %v4308_v33  ;;  %v2067_v49 = vpop.f32.mrf.mxu2  ;;  %v2096_v33 = vmax.f32 %v2065_v21, 0.0 }
 0x31d   :  { %v2068_v43 = vadd.f32 %v4342_v15, %v2067_v49 }
 0x31e   :  { %v2410_v53 = vmul.f32 0.125, %v2394_v16 }
 0x31f   :  { %v2333_v1 = vpop.f32.mrf.mxu3  ;;  %v2097_v40 = vmax.f32 %v2068_v43, 0.0 }
 0x320   :  { %v2334_v9 = vadd.f32 %v4342_v15, %v2333_v1  ;;  %2952 = vmatmul.msk.f32.vlgmr.msra.gmra.mxu0 %vm234_vm1, %v2410_v53  ;;  %v2095_v1 = vmax.f32 %v2062_v59, 0.0 }
 0x322   :  { %v2379_v41 = vmax.f32 %v2334_v9, 0.0 }
 0x324   :  { %v2395_v52 = vadd.f32 %v2379_v41, %v2105_v28  ;;  %v2111_v41 = vadd.f32 %v2095_v1, %v4315_v45 }
 0x326   :  { %v2411_v18 = vmul.f32 0.125, %v2395_v52 }
 0x327   :  { %v2336_v2 = vpop.f32.mrf.mxu3 }
 0x328   :  { %v2337_v63 = vadd.f32 %v4342_v15, %v2336_v2  ;;  %2953 = vmatmul.msk.f32.gmra.mxu0 %vm234_vm1, %v2411_v18  ;;  %v2070_v18 = vpop.f32.mrf.mxu2 }
 0x32a   :  { %v2380_v54 = vmax.f32 %v2337_v63, 0.0 }
 0x32c   :  { %v2396_v62 = vadd.f32 %v2380_v54, %v2106_v56  ;;  %v2112_v56 = vadd.f32 %v2096_v33, %v4322_v46 }
 0x32e   :  { %v2412_v24 = vmul.f32 0.125, %v2396_v62 }
 0x32f   :  { %v2339_v31 = vpop.f32.mrf.mxu3 }
 0x330   :  { %v2340_v58 = vadd.f32 %v4342_v15, %v2339_v31  ;;  %2954 = vmatmul.msk.f32.gmra.mxu0 %vm234_vm1, %v2412_v24  ;;  %v2073_v20 = vpop.f32.mrf.mxu2 }
 0x332   :  { %v2381_v51 = vmax.f32 %v2340_v58, 0.0  ;;  %v2113_v58 = vadd.f32 %v2097_v40, %v4329_v0  ;;  %v2074_v0 = vadd.f32 %v4342_v15, %v2073_v20 }
 0x334   :  { %v2397_v13 = vadd.f32 %v2381_v51, %v2107_v8  ;;  %v2071_v8 = vadd.f32 %v4342_v15, %v2070_v18 }
 0x336   :  { %v2413_v50 = vmul.f32 0.125, %v2397_v13  ;;  %v2098_v13 = vmax.f32 %v2071_v8, 0.0 }
 0x337   :  { %v2342_v6 = vpop.f32.mrf.mxu3 }
 0x338   :  { %v2343_v5 = vadd.f32 %v4342_v15, %v2342_v6  ;;  %2955 = vmatmul.msk.f32.gmra.mxu0 %vm234_vm1, %v2413_v50  ;;  %v2076_v6 = vpop.f32.mrf.mxu2 }
 0x33a   :  { %v2382_v36 = vmax.f32 %v2343_v5, 0.0  ;;  %v2114_v5 = vadd.f32 %v2098_v13, %v4336_v35 }
 0x33c   :  { %v2398_v12 = vadd.f32 %v2382_v36, %v2108_v27  ;;  %v2099_v36 = vmax.f32 %v2074_v0, 0.0 }
 0x33e   :  { %v2414_v47 = vmul.f32 0.125, %v2398_v12 }
 0x33f   :  { %v2345_v3 = vpop.f32.mrf.mxu3 }
 0x340   :  { %v2346_v26 = vadd.f32 %v4342_v15, %v2345_v3  ;;  %2956 = vmatmul.msk.f32.gmra.mxu0 %vm234_vm1, %v2414_v47  ;;  %v2115_v3 = vadd.f32 %v2099_v36, %v4348_v29 }
 0x342   :  { %v2383_v37 = vmax.f32 %v2346_v26, 0.0  ;;  %v2077_v26 = vadd.f32 %v4342_v15, %v2076_v6 }
 0x344   :  { %v2399_v60 = vadd.f32 %v2383_v37, %v2109_v39  ;;  %v2079_v39 = vpop.f32.mrf.mxu2  ;;  %v2100_v37 = vmax.f32 %v2077_v26, 0.0 }
 0x345   :  { %v2080_v23 = vadd.f32 %v4342_v15, %v2079_v39 }
 0x346   :  { %v2415_v57 = vmul.f32 0.125, %v2399_v60 }
 0x347   :  { %v2348_v25 = vpop.f32.mrf.mxu3  ;;  %v2101_v29 = vmax.f32 %v2080_v23, 0.0 }
 0x348   :  { %v2349_v22 = vadd.f32 %v4342_v15, %v2348_v25  ;;  %2957 = vmatmul.msk.f32.gmra.mxu0 %vm234_vm1, %v2415_v57  ;;  %v2116_v57 = vadd.f32 %v2100_v37, %v4355_v34 }
 0x34a   :  { %v2384_v16 = vmax.f32 %v2349_v22, 0.0 }
 0x34c   :  { %v2400_v53 = vadd.f32 %v2384_v16, %v2110_v14  ;;  %v2082_v14 = vpop.f32.mrf.mxu2 }
 0x34d   :  { %v2083_v1 = vadd.f32 %v4342_v15, %v2082_v14 }
 0x34e   :  { %v2416_v9 = vmul.f32 0.125, %v2400_v53  ;;  %v2117_v53 = vadd.f32 %v2101_v29, %v4362_v44 }
 0x34f   :  { %v2351_v28 = vpop.f32.mrf.mxu3 }
 0x350   :  { %v2352_v55 = vadd.f32 %v4342_v15, %v2351_v28  ;;  %2958 = vmatmul.msk.f32.gmra.mxu0 %vm234_vm1, %v2416_v9 }
 0x352   :  { %v2385_v52 = vmax.f32 %v2352_v55, 0.0  ;;  %v2102_v55 = vmax.f32 %v2083_v1, 0.0 }
 0x354   :  { %v2401_v61 = vadd.f32 %v2385_v52, %v2111_v41  ;;  %v2085_v41 = vpop.f32.mrf.mxu2 }
 0x355   :  { %v2086_v18 = vadd.f32 %v4342_v15, %v2085_v41  ;;  %v3002_v41 = vld [vmem:[%s4546_s8] ss:$0 sm:$0xff] }
 0x356   :  { %v2417_v10 = vmul.f32 0.125, %v2401_v61  ;;  %v2118_v61 = vadd.f32 %v2102_v55, %v4372_v7  ;;  %v3001_v7 = vld [vmem:[%s4544_s6] ss:$0 sm:$0xff] }
 0x357   :  { %v2354_v2 = vpop.f32.mrf.mxu3 }
 0x358   :  { %v2355_v63 = vadd.f32 %v4342_v15, %v2354_v2  ;;  %2959 = vmatmul.msk.f32.gmra.mxu0 %vm234_vm1, %v2417_v10  ;;  %v2103_v2 = vmax.f32 %v2086_v18, 0.0 }
 0x35a   :  { %v2386_v54 = vmax.f32 %v2355_v63, 0.0  ;;  %v2119_v43 = vadd.f32 %v2103_v2, %v4378_v19 }
 0x35c   :  { %v2402_v62 = vadd.f32 %v2386_v54, %v2112_v56 }
 0x35e   :  { %v2418_v45 = vmul.f32 0.125, %v2402_v62 }
 0x35f   :  { %v2357_v24 = vpop.f32.mrf.mxu3 }
 0x360   :  { %v2358_v31 = vadd.f32 %v4342_v15, %v2357_v24  ;;  %2960 = vmatmul.msk.f32.gmra.mxu0 %vm234_vm1, %v2418_v45 }
 0x362   :  { %v2387_v38 = vmax.f32 %v2358_v31, 0.0 }
 0x364   :  { %v2403_v51 = vadd.f32 %v2387_v38, %v2113_v58 }
 0x366   :  { %v2419_v46 = vmul.f32 0.125, %v2403_v51 }
 0x367   :  { %v2360_v50 = vpop.f32.mrf.mxu3 }
 0x368   :  { %v2361_v4 = vadd.f32 %v4342_v15, %v2360_v50  ;;  %2961 = vmatmul.msk.f32.gmra.mxu0 %vm234_vm1, %v2419_v46 }
 0x36a   :  { %v2388_v27 = vmax.f32 %v2361_v4, 0.0 }
 0x36c   :  { %v2404_v11 = vadd.f32 %v2388_v27, %v2114_v5 }
 0x36e   :  { %v2420_v12 = vmul.f32 0.125, %v2404_v11 }
 0x36f   :  { %v2363_v42 = vpop.f32.mrf.mxu3 }
 0x370   :  { %v2364_v47 = vadd.f32 %v4342_v15, %v2363_v42  ;;  %2962 = vmatmul.msk.f32.gmra.mxu0 %vm234_vm1, %v2420_v12 }
 0x372   :  { %v2389_v17 = vmax.f32 %v2364_v47, 0.0 }
 0x374   :  { %v2405_v32 = vadd.f32 %v2389_v17, %v2115_v3 }
 0x376   :  { %v2421_v35 = vmul.f32 0.125, %v2405_v32 }
 0x377   :  { %v2366_v60 = vpop.f32.mrf.mxu3 }
 0x378   :  { %v2367_v30 = vadd.f32 %v4342_v15, %v2366_v60  ;;  %2963 = vmatmul.msk.f32.gmra.mxu0 %vm234_vm1, %v2421_v35 }
 0x37a   :  { %v2390_v25 = vmax.f32 %v2367_v30, 0.0 }
 0x37c   :  { %v2406_v22 = vadd.f32 %v2390_v25, %v2116_v57 }
 0x37e   :  { %v2422_v59 = vmul.f32 0.125, %v2406_v22 }
 0x37f   :  { %v2369_v16 = vpop.f32.mrf.mxu3 }
 0x380   :  { %v2370_v49 = vadd.f32 %v4342_v15, %v2369_v16  ;;  %2964 = vmatmul.msk.f32.gmra.mxu0 %vm234_vm1, %v2422_v59 }
 0x382   :  { %v2391_v9 = vmax.f32 %v2370_v49, 0.0 }
 0x384   :  { %v2407_v28 = vadd.f32 %v2391_v9, %v2117_v53 }
 0x386   :  { %v2423_v34 = vmul.f32 0.125, %v2407_v28 }
 0x387   :  { %v2372_v21 = vpop.f32.mrf.mxu3 }
 0x388   :  { %v2373_v52 = vadd.f32 %v4342_v15, %v2372_v21  ;;  %2965 = vmatmul.msk.f32.gmra.mxu0 %vm234_vm1, %v2423_v34 }
 0x38a   :  { %v2392_v33 = vmax.f32 %v2373_v52, 0.0 }
 0x38c   :  { %v2408_v10 = vadd.f32 %v2392_v33, %v2118_v61 }
 0x38e   :  { %v2424_v44 = vmul.f32 0.125, %v2408_v10 }
 0x38f   :  { %v2375_v63 = vpop.f32.mrf.mxu3 }
 0x390   :  { %v2376_v56 = vadd.f32 %v4342_v15, %v2375_v63  ;;  %2966 = vmatmul.msk.f32.gmra.mxu0 %vm234_vm1, %v2424_v44 }
 0x392   :  { %v2393_v54 = vmax.f32 %v2376_v56, 0.0 }
 0x394   :  { %v2409_v62 = vadd.f32 %v2393_v54, %v2119_v43 }
 0x396   :  { %v2425_v40 = vmul.f32 0.125, %v2409_v62 }
 0x398   :  { %2967 = vmatmul.msk.f32.gmra.mxu0 %vm234_vm1, %v2425_v40 }
 0x39d   :  { %v2494_v45 = vpop.f32.mrf.mxu0 }
 0x39e   :  { %v2495_v20 = vadd.f32 %v3001_v7, %v2494_v45 }
 0x3a0   :  { %v2542_v24 = vmax.f32 %v2495_v20, 0.0 }
 0x3a2   :  { %2968 = vmatmul.msk.f32.vlgmr.msra.gmra.mxu2 %vm234_vm1, %v2542_v24 }
 0x3a5   :  { %v2497_v31 = vpop.f32.mrf.mxu0 }
 0x3a6   :  { %v2498_v15 = vadd.f32 %v3001_v7, %v2497_v31 }
 0x3a8   :  { %v2543_v58 = vmax.f32 %v2498_v15, 0.0 }
 0x3aa   :  { %2969 = vmatmul.msk.f32.gmra.mxu2 %vm234_vm1, %v2543_v58 }
 0x3ad   :  { %v2500_v19 = vpop.f32.mrf.mxu0 }
 0x3ae   :  { %v2501_v8 = vadd.f32 %v3001_v7, %v2500_v19 }
 0x3b0   :  { %v2544_v38 = vmax.f32 %v2501_v8, 0.0 }
 0x3b2   :  { %2970 = vmatmul.msk.f32.gmra.mxu2 %vm234_vm1, %v2544_v38 }
 0x3b5   :  { %v2503_v51 = vpop.f32.mrf.mxu0 }
 0x3b6   :  { %v2504_v13 = vadd.f32 %v3001_v7, %v2503_v51 }
 0x3b8   :  { %v2545_v46 = vmax.f32 %v2504_v13, 0.0 }
 0x3ba   :  { %2971 = vmatmul.msk.f32.gmra.mxu2 %vm234_vm1, %v2545_v46 }
 0x3bd   :  { %v2506_v48 = vpop.f32.mrf.mxu0 }
 0x3be   :  { %v2507_v50 = vadd.f32 %v3001_v7, %v2506_v48 }
 0x3c0   :  { %v2546_v4 = vmax.f32 %v2507_v50, 0.0 }
 0x3c2   :  { %2972 = vmatmul.msk.f32.gmra.mxu2 %vm234_vm1, %v2546_v4 }
 0x3c5   :  { %v2509_v6 = vpop.f32.mrf.mxu0 }
 0x3c6   :  { %v2510_v5 = vadd.f32 %v3001_v7, %v2509_v6 }
 0x3c8   :  { %v2547_v0 = vmax.f32 %v2510_v5, 0.0 }
 0x3ca   :  { %2973 = vmatmul.msk.f32.gmra.mxu2 %vm234_vm1, %v2547_v0 }
 0x3cd   :  { %v2512_v27 = vpop.f32.mrf.mxu0 }
 0x3ce   :  { %v2513_v11 = vadd.f32 %v3001_v7, %v2512_v27 }
 0x3d0   :  { %v2548_v36 = vmax.f32 %v2513_v11, 0.0 }
 0x3d2   :  { %2974 = vmatmul.msk.f32.gmra.mxu2 %vm234_vm1, %v2548_v36 }
 0x3d5   :  { %v2515_v12 = vpop.f32.mrf.mxu0 }
 0x3d6   :  { %v2516_v42 = vadd.f32 %v3001_v7, %v2515_v12 }
 0x3d8   :  { %v2549_v47 = vmax.f32 %v2516_v42, 0.0 }
 0x3da   :  { %2975 = vmatmul.msk.f32.gmra.mxu2 %vm234_vm1, %v2549_v47 }
 0x3dd   :  { %v2518_v3 = vpop.f32.mrf.mxu0 }
 0x3de   :  { %v2519_v26 = vadd.f32 %v3001_v7, %v2518_v3 }
 0x3e0   :  { %v2550_v17 = vmax.f32 %v2519_v26, 0.0 }
 0x3e2   :  { %2976 = vmatmul.msk.f32.gmra.mxu2 %vm234_vm1, %v2550_v17 }
 0x3e5   :  { %v2521_v39 = vpop.f32.mrf.mxu0 }
 0x3e6   :  { %v2522_v32 = vadd.f32 %v3001_v7, %v2521_v39 }
 0x3e8   :  { %v2551_v37 = vmax.f32 %v2522_v32, 0.0 }
 0x3ea   :  { %2977 = vmatmul.msk.f32.gmra.mxu2 %vm234_vm1, %v2551_v37 }
 0x3ed   :  { %v2524_v35 = vpop.f32.mrf.mxu0 }
 0x3ee   :  { %v2525_v60 = vadd.f32 %v3001_v7, %v2524_v35 }
 0x3f0   :  { %v2552_v30 = vmax.f32 %v2525_v60, 0.0 }
 0x3f2   :  { %2978 = vmatmul.msk.f32.gmra.mxu2 %vm234_vm1, %v2552_v30 }
 0x3f5   :  { %v2527_v57 = vpop.f32.mrf.mxu0 }
 0x3f6   :  { %v2528_v23 = vadd.f32 %v3001_v7, %v2527_v57 }
 0x3f8   :  { %v2553_v25 = vmax.f32 %v2528_v23, 0.0 }
 0x3fa   :  { %2979 = vmatmul.msk.f32.gmra.mxu2 %vm234_vm1, %v2553_v25 }
 0x3fd   :  { %v2530_v22 = vpop.f32.mrf.mxu0 }
 0x3fe   :  { %v2531_v14 = vadd.f32 %v3001_v7, %v2530_v22 }
 0x400   :  { %v2554_v29 = vmax.f32 %v2531_v14, 0.0 }
 0x402   :  { %2980 = vmatmul.msk.f32.gmra.mxu2 %vm234_vm1, %v2554_v29 }
 0x405   :  { %v2533_v59 = vpop.f32.mrf.mxu0 }
 0x406   :  { %v2534_v16 = vadd.f32 %v3001_v7, %v2533_v59 }
 0x408   :  { %v2555_v49 = vmax.f32 %v2534_v16, 0.0 }
 0x40a   :  { %2981 = vmatmul.msk.f32.gmra.mxu2 %vm234_vm1, %v2555_v49 }
 0x40d   :  { %v2536_v53 = vpop.f32.mrf.mxu0 }
 0x40e   :  { %v2537_v1 = vadd.f32 %v3001_v7, %v2536_v53 }
 0x410   :  { %v2556_v9 = vmax.f32 %v2537_v1, 0.0 }
 0x412   :  { %2982 = vmatmul.msk.f32.gmra.mxu2 %vm234_vm1, %v2556_v9 }
 0x415   :  { %v2539_v28 = vpop.f32.mrf.mxu0 }
 0x416   :  { %v2540_v55 = vadd.f32 %v3001_v7, %v2539_v28 }
 0x418   :  { %v2557_v34 = vmax.f32 %v2540_v55, 0.0 }
 0x41a   :  { %2983 = vmatmul.msk.f32.gmra.mxu2 %vm234_vm1, %v2557_v34 }
 0x425   :  { %v2626_v21 = vpop.f32.mrf.mxu2 }
 0x426   :  { %v2627_v52 = vadd.f32 %v3002_v41, %v2626_v21 }
 0x428   :  { %2674 = vst.msk [vmem:[%s4547_s9] sm:$0xff] %vm101_vm0, %v2627_v52 }
 0x42d   :  { %v2629_v61 = vpop.f32.mrf.mxu2 }
 0x42e   :  { %v2630_v18 = vadd.f32 %v3002_v41, %v2629_v61 }
 0x430   :  { %2675 = vst.msk [vmem:[%s4547_s9 + $0x8] sm:$0xff] %vm101_vm0, %v2630_v18 }
 0x435   :  { %v2632_v33 = vpop.f32.mrf.mxu2 }
 0x436   :  { %v2633_v10 = vadd.f32 %v3002_v41, %v2632_v33 }
 0x438   :  { %2676 = vst.msk [vmem:[%s4547_s9 + $0x10] sm:$0xff] %vm101_vm0, %v2633_v10 }
 0x43d   :  { %v2635_v2 = vpop.f32.mrf.mxu2 }
 0x43e   :  { %v2636_v44 = vadd.f32 %v3002_v41, %v2635_v2 }
 0x440   :  { %2677 = vst.msk [vmem:[%s4547_s9 + $0x18] sm:$0xff] %vm101_vm0, %v2636_v44 }
 0x445   :  { %v2638_v63 = vpop.f32.mrf.mxu2 }
 0x446   :  { %v2639_v56 = vadd.f32 %v3002_v41, %v2638_v63 }
 0x448   :  { %2678 = vst.msk [vmem:[%s4547_s9 + $0x20] sm:$0xff] %vm101_vm0, %v2639_v56 }
 0x44d   :  { %v2641_v43 = vpop.f32.mrf.mxu2 }
 0x44e   :  { %v2642_v54 = vadd.f32 %v3002_v41, %v2641_v43 }
 0x450   :  { %2679 = vst.msk [vmem:[%s4547_s9 + $0x28] sm:$0xff] %vm101_vm0, %v2642_v54 }
 0x455   :  { %v2644_v62 = vpop.f32.mrf.mxu2 }
 0x456   :  { %v2645_v40 = vadd.f32 %v3002_v41, %v2644_v62 }
 0x458   :  { %2680 = vst.msk [vmem:[%s4547_s9 + $0x30] sm:$0xff] %vm101_vm0, %v2645_v40 }
 0x45d   :  { %v2647_v7 = vpop.f32.mrf.mxu2 }
 0x45e   :  { %v2648_v45 = vadd.f32 %v3002_v41, %v2647_v7 }
 0x460   :  { %2681 = vst.msk [vmem:[%s4547_s9 + $0x38] sm:$0xff] %vm101_vm0, %v2648_v45 }
 0x465   :  { %v2650_v20 = vpop.f32.mrf.mxu2 }
 0x466   :  { %v2651_v24 = vadd.f32 %v3002_v41, %v2650_v20 }
 0x468   :  { %2682 = vst.msk [vmem:[%s4547_s9 + $0x40] sm:$0xff] %vm101_vm0, %v2651_v24 }
 0x46d   :  { %v2653_v31 = vpop.f32.mrf.mxu2 }
 0x46e   :  { %v2654_v15 = vadd.f32 %v3002_v41, %v2653_v31 }
 0x470   :  { %2683 = vst.msk [vmem:[%s4547_s9 + $0x48] sm:$0xff] %vm101_vm0, %v2654_v15 }
 0x475   :  { %v2656_v58 = vpop.f32.mrf.mxu2 }
 0x476   :  { %v2657_v19 = vadd.f32 %v3002_v41, %v2656_v58 }
 0x478   :  { %2684 = vst.msk [vmem:[%s4547_s9 + $0x50] sm:$0xff] %vm101_vm0, %v2657_v19 }
 0x47d   :  { %v2659_v8 = vpop.f32.mrf.mxu2 }
 0x47e   :  { %v2660_v38 = vadd.f32 %v3002_v41, %v2659_v8 }
 0x480   :  { %2685 = vst.msk [vmem:[%s4547_s9 + $0x58] sm:$0xff] %vm101_vm0, %v2660_v38 }
 0x485   :  { %v2662_v51 = vpop.f32.mrf.mxu2 }
 0x486   :  { %v2663_v13 = vadd.f32 %v3002_v41, %v2662_v51 }
 0x488   :  { %2686 = vst.msk [vmem:[%s4547_s9 + $0x60] sm:$0xff] %vm101_vm0, %v2663_v13 }
 0x48d   :  { %v2665_v46 = vpop.f32.mrf.mxu2 }
 0x48e   :  { %v2666_v48 = vadd.f32 %v3002_v41, %v2665_v46 }
 0x490   :  { %2687 = vst.msk [vmem:[%s4547_s9 + $0x68] sm:$0xff] %vm101_vm0, %v2666_v48 }
 0x495   :  { %v2668_v50 = vpop.f32.mrf.mxu2 }
 0x496   :  { %v2669_v4 = vadd.f32 %v3002_v41, %v2668_v50 }
 0x498   :  { %2688 = vst.msk [vmem:[%s4547_s9 + $0x70] sm:$0xff] %vm101_vm0, %v2669_v4 }
 0x49d   :  { %v2671_v6 = vpop.f32.mrf.mxu2 }
 0x49e   :  { %v2672_v5 = vadd.f32 %v3002_v41, %v2671_v6 }
 0x4a0   :  { %2689 = vst.msk [vmem:[%s4547_s9 + $0x78] sm:$0xff] %vm101_vm0, %v2672_v5 }
 0x4a1   :  { %2694 = vsyncpa [#allocation3], 1 }
 0x4a2   :  { %2695 = vsyncpa [#allocation5], 1 }

</bundles_post_ra>
